<compile_context>
chip_gen: v7x
topology: tpu7x:2x2x1
jax: 0.10.0
libtpu: 0.0.40
codegen_flags: <defaults>
</compile_context>

<pallas_src>
import functools
import math

import jax
import jax.numpy as jnp
import numpy as np
from jax.experimental import pallas as pl
from jax.experimental.pallas import tpu as pltpu


def _round_up(x, m):
    return ((x + m - 1) // m) * m


def _fusion_kernel(q_ref, k_ref, v_ref,
                   wq_ref, bq_ref, wk_ref, bk_ref, wv_ref, bv_ref,
                   wf_ref, bf_ref, out_ref, *,
                   num_heads, head_pad, seq_valid, compute_dtype, approx_recip):
    """One batch tile per grid step (grid axis 0, 'parallel').

    All heads are handled in one shot via head-stacked, lane-padded weights;
    per-head slices are 128-aligned views.  Projections are lane-dense MXU
    matmuls; per-head score/context math runs on the VPU/XLU."""
    TB = q_ref.shape[0]
    Sp = k_ref.shape[1]
    Hin = k_ref.shape[2]
    NH = num_heads
    Hpad = head_pad
    cd = compute_dtype

    q = q_ref[...]                                    # [TB, Hin]   (compute dtype)
    keys = k_ref[...].reshape(TB * Sp, Hin)           # pure relabel (Sp % 8 == 0)
    vals = v_ref[...].reshape(TB * Sp, Hin)

    # Head-stacked projections (1/sqrt(H) already folded into wq/bq).
    Q = jnp.dot(q, wq_ref[...], preferred_element_type=jnp.float32) + bq_ref[...]     # [TB, NH*Hpad]
    K = jnp.dot(keys, wk_ref[...], preferred_element_type=jnp.float32) + bk_ref[...]  # [TB*Sp, NH*Hpad]
    V = jnp.dot(vals, wv_ref[...], preferred_element_type=jnp.float32) + bv_ref[...]

    K = K.reshape(TB, Sp, NH * Hpad)
    V = V.reshape(TB, Sp, NH * Hpad)

    # Static mask for the wrapper-side sequence padding (skipped when unpadded).
    seq_mask = None
    if Sp != seq_valid:
        pos = jax.lax.broadcasted_iota(jnp.int32, (1, Sp), 1)
        seq_mask = pos < seq_valid                    # [1, Sp]

    fused = jnp.zeros((TB, out_ref.shape[1]), jnp.float32) + bf_ref[...]
    for n in range(NH):                               # NH small & static -> unrolled
        lo = n * Hpad
        Qh = Q[:, lo:lo + Hpad]                       # [TB, Hpad]      (padded lanes are 0)
        Kh = K[:, :, lo:lo + Hpad]                    # [TB, Sp, Hpad]
        Vh = V[:, :, lo:lo + Hpad]

        # scores: VPU multiply + lane (XLU) reduce — no TB tiny M=1 matmuls.
        s = jnp.sum(Qh[:, None, :] * Kh, axis=-1)     # [TB, Sp] f32
        if seq_mask is not None:
            s = jnp.where(seq_mask, s, -1e30)

        # softmax over the sequence axis, statistics kept in f32.
        m = jnp.max(s, axis=-1, keepdims=True)
        e = jnp.exp(s - m)
        denom = jnp.sum(e, axis=-1, keepdims=True)
        if approx_recip:
            p = e * pl.reciprocal(denom, approx=True)
        else:
            p = e / denom

        # context: VPU multiply + sublane (XLU) reduce.
        ctx = jnp.sum(p[:, :, None] * Vh, axis=1)     # [TB, Hpad] f32

        # fuse this head directly (no lane-axis concat); f32 accumulation.
        fused = fused + jnp.dot(ctx.astype(cd), wf_ref[lo:lo + Hpad, :],
                                preferred_element_type=jnp.float32)

    out_ref[...] = fused.astype(out_ref.dtype)


def attention_based_fusion(query, keys, values,
                           wq, bq, wk, bk, wv, bv, wf, bf,
                           *, compute_dtype=jnp.bfloat16):
    """query [B,H]; keys/values [B,S,H]; wq/wk/wv [NH,H,H] (torch weight[out,in]);
    bq/bk/bv [NH,H]; wf [H, NH*H] (torch weight[out,in]); bf [H].
    Returns the fused context [B,H] (f32)."""
    B, H = query.shape
    _, S, _ = keys.shape
    NH = wq.shape[0]

    Hpad = _round_up(H, 128)      # per-head lane slab -> aligned per-head slices
    Hp_out = _round_up(H, 128)    # lane-dense output store
    NHHp = NH * Hpad
    inv_scale = 1.0 / math.sqrt(float(H))

    # ----- wrapper-side layout plumbing (free relative to kernel time) -----
    def _stack_w(w, scale=1.0):
        # w[n, out, in] -> w_all[in, n*Hpad + out], zero-padded per-head lanes.
        wt = jnp.transpose(w, (0, 2, 1)).astype(jnp.float32) * scale    # [n, in, out]
        wt = jnp.pad(wt, ((0, 0), (0, 0), (0, Hpad - H)))
        return jnp.transpose(wt, (1, 0, 2)).reshape(H, NHHp).astype(compute_dtype)

    def _stack_b(b, scale=1.0):
        bp = jnp.pad(b.astype(jnp.float32) * scale, ((0, 0), (0, Hpad - H)))
        return bp.reshape(1, NHHp)

    # 1/sqrt(H) folded into the query projection (weights AND bias).
    wq_all = _stack_w(wq, inv_scale)
    bq_all = _stack_b(bq, inv_scale)
    wk_all = _stack_w(wk)
    bk_all = _stack_b(bk)
    wv_all = _stack_w(wv)
    bv_all = _stack_b(bv)

    # Fusion weight: torch wf[out, NH*H] -> [NH*Hpad, Hp_out] with zero rows for
    # the per-head lane padding; output lanes padded to a 128 multiple.
    wf_r = jnp.transpose(wf.reshape(H, NH, H), (1, 2, 0))                # [n, in, out]
    wf_r = jnp.pad(wf_r, ((0, 0), (0, Hpad - H), (0, Hp_out - H)))
    wf_t = wf_r.reshape(NHHp, Hp_out).astype(compute_dtype)
    bf_p = jnp.pad(bf.astype(jnp.float32), (0, Hp_out - H)).reshape(1, Hp_out)

    # Stream activations in the compute dtype (halves K/V HBM traffic for bf16).
    query_c = query.astype(compute_dtype)
    keys_c = keys.astype(compute_dtype)
    values_c = values.astype(compute_dtype)

    # Pad S to a sublane multiple -> in-kernel 3D->2D reshape is a pure relabel;
    # padded positions are masked out of the softmax inside the kernel.
    Sp = _round_up(S, 8)
    if Sp != S:
        keys_c = jnp.pad(keys_c, ((0, 0), (0, Sp - S), (0, 0)))
        values_c = jnp.pad(values_c, ((0, 0), (0, Sp - S), (0, 0)))

    # ----- generation-aware VMEM budgeting / batch-tile sizing -----
    try:
        vmem_cap = int(getattr(pltpu.get_tpu_info(), "vmem_capacity_bytes", 0)) or (64 << 20)
    except Exception:
        vmem_cap = 64 << 20                       # conservative fallback
    vmem_limit = (vmem_cap * 3) // 4              # 96 MiB on 128-MiB parts, 48 MiB on v7x

    in_sz = jnp.dtype(compute_dtype).itemsize
    per_row = (2 * (H + 2 * Sp * H) * in_sz       # q/k/v input blocks (double-buffered)
               + 2 * Hp_out * 4                   # output block (double-buffered)
               + (1 + 2 * Sp) * NHHp * 4          # f32 Q/K/V projection intermediates
               + 2 * Sp * Hpad * 4                # per-head score/context temporaries
               + 2 * Hp_out * 4)                  # fused accumulator + slack
    weight_bytes = 2 * ((3 * H * NHHp + NHHp * Hp_out) * in_sz
                        + (3 * NHHp + Hp_out) * 4)   # grid-invariant, double-buffered
    budget = max((vmem_limit * 3) // 5 - weight_bytes, 0)

    sub = 16 if jnp.dtype(compute_dtype) == jnp.dtype(jnp.bfloat16) else 8
    max_rows = max(sub, budget // max(per_row, 1))
    block_b = max(sub, min(_round_up(B, sub), (max_rows // sub) * sub))
    # keep >=2 grid steps when the batch allows (v7x megacore + DMA/compute overlap)
    if _round_up(B, sub) >= 2 * sub:
        block_b = min(block_b, _round_up((_round_up(B, sub) + 1) // 2, sub))
    Bp = _round_up(max(B, block_b), block_b)
    if Bp != B:
        pad = Bp - B
        query_c = jnp.pad(query_c, ((0, pad), (0, 0)))
        keys_c = jnp.pad(keys_c, ((0, pad), (0, 0), (0, 0)))
        values_c = jnp.pad(values_c, ((0, pad), (0, 0), (0, 0)))

    kernel = functools.partial(
        _fusion_kernel,
        num_heads=NH, head_pad=Hpad, seq_valid=S,
        compute_dtype=compute_dtype,
        approx_recip=(jnp.dtype(compute_dtype) != jnp.dtype(jnp.float32)))

    out = pl.pallas_call(
        kernel,
        out_shape=jax.ShapeDtypeStruct((Bp, Hp_out), jnp.float32),
        grid_spec=pltpu.PrefetchScalarGridSpec(
            num_scalar_prefetch=0,
            grid=(Bp // block_b,),
            in_specs=[
                pl.BlockSpec((block_b, H), lambda i: (i, 0)),          # query
                pl.BlockSpec((block_b, Sp, H), lambda i: (i, 0, 0)),   # keys
                pl.BlockSpec((block_b, Sp, H), lambda i: (i, 0, 0)),   # values
                pl.BlockSpec((H, NHHp), lambda i: (0, 0)),             # Wq stacked (scaled)
                pl.BlockSpec((1, NHHp), lambda i: (0, 0)),             # bq (scaled)
                pl.BlockSpec((H, NHHp), lambda i: (0, 0)),             # Wk stacked
                pl.BlockSpec((1, NHHp), lambda i: (0, 0)),             # bk
                pl.BlockSpec((H, NHHp), lambda i: (0, 0)),             # Wv stacked
                pl.BlockSpec((1, NHHp), lambda i: (0, 0)),             # bv
                pl.BlockSpec((NHHp, Hp_out), lambda i: (0, 0)),        # Wf^T (head-row aligned)
                pl.BlockSpec((1, Hp_out), lambda i: (0, 0)),           # bf (lane-padded)
            ],
            out_specs=pl.BlockSpec((block_b, Hp_out), lambda i: (i, 0)),
        ),
        compiler_params=pltpu.CompilerParams(
            dimension_semantics=("parallel",),        # batch tiles -> both TCs on v7x
            vmem_limit_bytes=int(vmem_limit)),
    )(query_c, keys_c, values_c,
      wq_all, bq_all, wk_all, bk_all, wv_all, bv_all, wf_t, bf_p)

    return out[:B, :H]


def _reference(query, keys, values, wq, bq, wk, bk, wv, bv, wf, bf):
    """Pure-JAX port of the PyTorch forward, for correctness check."""
    NH, H, _ = wq.shape
    scale = float(H) ** 0.5
    contexts = []
    for h in range(NH):
        Q = query @ wq[h].T + bq[h]
        K = jnp.einsum('bsh,oh->bso', keys, wk[h]) + bk[h]
        V = jnp.einsum('bsh,oh->bso', values, wv[h]) + bv[h]
        scores = jnp.einsum('bso,bo->bs', K, Q) / scale
        attn = jax.nn.softmax(scores, axis=1)
        contexts.append(jnp.einsum('bs,bso->bo', attn, V))
    agg = jnp.concatenate(contexts, axis=1)
    return agg @ wf.T + bf


if __name__ == "__main__":
    def _run_case(B, S, H, NH, seed_key):
        ks = jax.random.split(seed_key, 11)
        query = jax.random.normal(ks[0], (B, H), jnp.float32)
        keys_ = jax.random.normal(ks[1], (B, S, H), jnp.float32)
        values = jax.random.normal(ks[2], (B, S, H), jnp.float32)
        # torch nn.Linear parameter shapes: weight[out, in], bias[out]
        wq = 0.1 * jax.random.normal(ks[3], (NH, H, H), jnp.float32)
        bq = 0.1 * jax.random.normal(ks[4], (NH, H), jnp.float32)
        wk = 0.1 * jax.random.normal(ks[5], (NH, H, H), jnp.float32)
        bk = 0.1 * jax.random.normal(ks[6], (NH, H), jnp.float32)
        wv = 0.1 * jax.random.normal(ks[7], (NH, H, H), jnp.float32)
        bv = 0.1 * jax.random.normal(ks[8], (NH, H), jnp.float32)
        wf = 0.1 * jax.random.normal(ks[9], (H, NH * H), jnp.float32)
        bf = 0.1 * jax.random.normal(ks[10], (H,), jnp.float32)

        ref = np.asarray(jax.block_until_ready(
            _reference(query, keys_, values, wq, bq, wk, bk, wv, bv, wf, bf)))

        # Exact-precision path (f32 matmuls) — tight tolerance.
        out_f32 = attention_based_fusion(query, keys_, values,
                                         wq, bq, wk, bk, wv, bv, wf, bf,
                                         compute_dtype=jnp.float32)
        out_f32 = np.asarray(jax.block_until_ready(out_f32))
        np.testing.assert_allclose(out_f32, ref, rtol=1e-4, atol=1e-4)

        # Fast path (bf16 MXU matmuls, f32 softmax stats/accum) — bf16 tolerance.
        out_bf16 = attention_based_fusion(query, keys_, values,
                                          wq, bq, wk, bk, wv, bv, wf, bf,
                                          compute_dtype=jnp.bfloat16)
        out_bf16 = np.asarray(jax.block_until_ready(out_bf16))
        np.testing.assert_allclose(out_bf16, ref, rtol=5e-2, atol=5e-2)

    root = jax.random.PRNGKey(0)
    k1, k2 = jax.random.split(root)
    _run_case(B=2, S=8, H=32, NH=2, seed_key=k1)
    # ragged sequence length exercises the in-kernel seq-padding mask path
    _run_case(B=3, S=5, H=32, NH=3, seed_key=k2)
    print("KERNEL_OK")
</pallas_src>

<mosaic_0001>
module attributes {stable_mosaic.version = 11 : i64} {
  func.func @_fusion_kernel(%arg0: i32, %arg1: memref<8x32xf32, #tpu.memory_space<vmem>>, %arg2: memref<8x8x32xf32, #tpu.memory_space<vmem>>, %arg3: memref<8x8x32xf32, #tpu.memory_space<vmem>>, %arg4: memref<32x256xf32, #tpu.memory_space<vmem>>, %arg5: memref<1x256xf32, #tpu.memory_space<vmem>>, %arg6: memref<32x256xf32, #tpu.memory_space<vmem>>, %arg7: memref<1x256xf32, #tpu.memory_space<vmem>>, %arg8: memref<32x256xf32, #tpu.memory_space<vmem>>, %arg9: memref<1x256xf32, #tpu.memory_space<vmem>>, %arg10: memref<256x128xf32, #tpu.memory_space<vmem>>, %arg11: memref<1x128xf32, #tpu.memory_space<vmem>>, %arg12: memref<8x128xf32, #tpu.memory_space<vmem>>) attributes {dimension_semantics = [#tpu.dimension_semantics<parallel>], iteration_bounds = array<i64: 1>, scalar_prefetch = 0 : i64, scratch_operands = 0 : i64, tpu.core_type = #tpu.core_type<tc>, window_params = [{transform_indices = @transform_0, window_bounds = array<i64: 8, 32>}, {transform_indices = @transform_1, window_bounds = array<i64: 8, 8, 32>}, {transform_indices = @transform_2, window_bounds = array<i64: 8, 8, 32>}, {pipeline_mode = #tpu.pipeline_mode<synchronous>, transform_indices = @transform_3, window_bounds = array<i64: 32, 256>}, {pipeline_mode = #tpu.pipeline_mode<synchronous>, transform_indices = @transform_4, window_bounds = array<i64: 1, 256>}, {pipeline_mode = #tpu.pipeline_mode<synchronous>, transform_indices = @transform_5, window_bounds = array<i64: 32, 256>}, {pipeline_mode = #tpu.pipeline_mode<synchronous>, transform_indices = @transform_6, window_bounds = array<i64: 1, 256>}, {pipeline_mode = #tpu.pipeline_mode<synchronous>, transform_indices = @transform_7, window_bounds = array<i64: 32, 256>}, {pipeline_mode = #tpu.pipeline_mode<synchronous>, transform_indices = @transform_8, window_bounds = array<i64: 1, 256>}, {pipeline_mode = #tpu.pipeline_mode<synchronous>, transform_indices = @transform_9, window_bounds = array<i64: 256, 128>}, {pipeline_mode = #tpu.pipeline_mode<synchronous>, transform_indices = @transform_10, window_bounds = array<i64: 1, 128>}, {transform_indices = @transform_11, window_bounds = array<i64: 8, 128>}]} {
    %c0 = arith.constant 0 : index
    %c0_0 = arith.constant 0 : index
    %0 = vector.load %arg1[%c0, %c0_0] : memref<8x32xf32, #tpu.memory_space<vmem>>, vector<8x32xf32>
    %c0_1 = arith.constant 0 : index
    %c0_2 = arith.constant 0 : index
    %c0_3 = arith.constant 0 : index
    %1 = vector.load %arg2[%c0_1, %c0_2, %c0_3] : memref<8x8x32xf32, #tpu.memory_space<vmem>>, vector<8x8x32xf32>
    %2 = vector.shape_cast %1 : vector<8x8x32xf32> to vector<64x32xf32>
    %c0_4 = arith.constant 0 : index
    %c0_5 = arith.constant 0 : index
    %c0_6 = arith.constant 0 : index
    %3 = vector.load %arg3[%c0_4, %c0_5, %c0_6] : memref<8x8x32xf32, #tpu.memory_space<vmem>>, vector<8x8x32xf32>
    %4 = vector.shape_cast %3 : vector<8x8x32xf32> to vector<64x32xf32>
    %c0_7 = arith.constant 0 : index
    %c0_8 = arith.constant 0 : index
    %5 = vector.load %arg4[%c0_7, %c0_8] : memref<32x256xf32, #tpu.memory_space<vmem>>, vector<32x256xf32>
    %cst = arith.constant dense<0.000000e+00> : vector<8x256xf32>
    %6 = tpu.matmul %0, %5, %cst {dimension_numbers = #tpu.dot_dimension_numbers<[1], [0], [0], [1], [0, 0, 1, 1], [], []>} : vector<8x32xf32>, vector<32x256xf32>, vector<8x256xf32> -> vector<8x256xf32>
    %c0_9 = arith.constant 0 : index
    %c0_10 = arith.constant 0 : index
    %7 = vector.load %arg5[%c0_9, %c0_10] : memref<1x256xf32, #tpu.memory_space<vmem>>, vector<1x256xf32>
    %8 = vector.broadcast %7 : vector<1x256xf32> to vector<8x256xf32>
    %9 = arith.addf %6, %8 : vector<8x256xf32>
    %c0_11 = arith.constant 0 : index
    %c0_12 = arith.constant 0 : index
    %10 = vector.load %arg6[%c0_11, %c0_12] : memref<32x256xf32, #tpu.memory_space<vmem>>, vector<32x256xf32>
    %cst_13 = arith.constant dense<0.000000e+00> : vector<64x256xf32>
    %11 = tpu.matmul %2, %10, %cst_13 {dimension_numbers = #tpu.dot_dimension_numbers<[1], [0], [0], [1], [0, 0, 1, 1], [], []>} : vector<64x32xf32>, vector<32x256xf32>, vector<64x256xf32> -> vector<64x256xf32>
    %c0_14 = arith.constant 0 : index
    %c0_15 = arith.constant 0 : index
    %12 = vector.load %arg7[%c0_14, %c0_15] : memref<1x256xf32, #tpu.memory_space<vmem>>, vector<1x256xf32>
    %13 = vector.broadcast %12 : vector<1x256xf32> to vector<64x256xf32>
    %14 = arith.addf %11, %13 : vector<64x256xf32>
    %c0_16 = arith.constant 0 : index
    %c0_17 = arith.constant 0 : index
    %15 = vector.load %arg8[%c0_16, %c0_17] : memref<32x256xf32, #tpu.memory_space<vmem>>, vector<32x256xf32>
    %cst_18 = arith.constant dense<0.000000e+00> : vector<64x256xf32>
    %16 = tpu.matmul %4, %15, %cst_18 {dimension_numbers = #tpu.dot_dimension_numbers<[1], [0], [0], [1], [0, 0, 1, 1], [], []>} : vector<64x32xf32>, vector<32x256xf32>, vector<64x256xf32> -> vector<64x256xf32>
    %c0_19 = arith.constant 0 : index
    %c0_20 = arith.constant 0 : index
    %17 = vector.load %arg9[%c0_19, %c0_20] : memref<1x256xf32, #tpu.memory_space<vmem>>, vector<1x256xf32>
    %18 = vector.broadcast %17 : vector<1x256xf32> to vector<64x256xf32>
    %19 = arith.addf %16, %18 : vector<64x256xf32>
    %20 = vector.shape_cast %14 : vector<64x256xf32> to vector<8x8x256xf32>
    %21 = vector.shape_cast %19 : vector<64x256xf32> to vector<8x8x256xf32>
    %cst_21 = arith.constant 0.000000e+00 : f32
    %22 = vector.broadcast %cst_21 : f32 to vector<8x128xf32>
    %c0_22 = arith.constant 0 : index
    %c0_23 = arith.constant 0 : index
    %23 = vector.load %arg11[%c0_22, %c0_23] : memref<1x128xf32, #tpu.memory_space<vmem>>, vector<1x128xf32>
    %24 = vector.broadcast %23 : vector<1x128xf32> to vector<8x128xf32>
    %25 = arith.addf %22, %24 : vector<8x128xf32>
    %26 = vector.extract_strided_slice %9 {offsets = [0, 0], sizes = [8, 128], strides = [1, 1]} : vector<8x256xf32> to vector<8x128xf32>
    %27 = vector.extract_strided_slice %20 {offsets = [0, 0, 0], sizes = [8, 8, 128], strides = [1, 1, 1]} : vector<8x8x256xf32> to vector<8x8x128xf32>
    %28 = vector.extract_strided_slice %21 {offsets = [0, 0, 0], sizes = [8, 8, 128], strides = [1, 1, 1]} : vector<8x8x256xf32> to vector<8x8x128xf32>
    %29 = vector.shape_cast %26 : vector<8x128xf32> to vector<8x1x128xf32>
    %30 = vector.broadcast %29 : vector<8x1x128xf32> to vector<8x8x128xf32>
    %31 = arith.mulf %30, %27 : vector<8x8x128xf32>
    %cst_24 = arith.constant dense<0.000000e+00> : vector<8x8xf32>
    %32 = vector.multi_reduction <add>, %31, %cst_24 [2] : vector<8x8x128xf32> to vector<8x8xf32>
    %cst_25 = arith.constant dense<0xFF800000> : vector<8xf32>
    %33 = vector.multi_reduction <maximumf>, %32, %cst_25 [1] : vector<8x8xf32> to vector<8xf32>
    %34 = vector.shape_cast %33 : vector<8xf32> to vector<8x1xf32>
    %35 = vector.broadcast %34 : vector<8x1xf32> to vector<8x8xf32>
    %36 = arith.subf %32, %35 : vector<8x8xf32>
    %37 = math.exp %36 : vector<8x8xf32>
    %cst_26 = arith.constant dense<0.000000e+00> : vector<8xf32>
    %38 = vector.multi_reduction <add>, %37, %cst_26 [1] : vector<8x8xf32> to vector<8xf32>
    %39 = vector.shape_cast %38 : vector<8xf32> to vector<8x1xf32>
    %40 = vector.broadcast %39 : vector<8x1xf32> to vector<8x8xf32>
    %41 = arith.divf %37, %40 : vector<8x8xf32>
    %42 = vector.shape_cast %41 : vector<8x8xf32> to vector<8x8x1xf32>
    %43 = vector.broadcast %42 : vector<8x8x1xf32> to vector<8x8x128xf32>
    %44 = arith.mulf %43, %28 : vector<8x8x128xf32>
    %cst_27 = arith.constant dense<0.000000e+00> : vector<8x128xf32>
    %45 = vector.multi_reduction <add>, %44, %cst_27 [1] : vector<8x8x128xf32> to vector<8x128xf32>
    %c0_28 = arith.constant 0 : index
    %c0_29 = arith.constant 0 : index
    %46 = vector.load %arg10[%c0_28, %c0_29] : memref<256x128xf32, #tpu.memory_space<vmem>>, vector<128x128xf32>
    %cst_30 = arith.constant dense<0.000000e+00> : vector<8x128xf32>
    %47 = tpu.matmul %45, %46, %cst_30 {dimension_numbers = #tpu.dot_dimension_numbers<[1], [0], [0], [1], [0, 0, 1, 1], [], []>} : vector<8x128xf32>, vector<128x128xf32>, vector<8x128xf32> -> vector<8x128xf32>
    %48 = arith.addf %25, %47 : vector<8x128xf32>
    %49 = vector.extract_strided_slice %9 {offsets = [0, 128], sizes = [8, 128], strides = [1, 1]} : vector<8x256xf32> to vector<8x128xf32>
    %50 = vector.extract_strided_slice %20 {offsets = [0, 0, 128], sizes = [8, 8, 128], strides = [1, 1, 1]} : vector<8x8x256xf32> to vector<8x8x128xf32>
    %51 = vector.extract_strided_slice %21 {offsets = [0, 0, 128], sizes = [8, 8, 128], strides = [1, 1, 1]} : vector<8x8x256xf32> to vector<8x8x128xf32>
    %52 = vector.shape_cast %49 : vector<8x128xf32> to vector<8x1x128xf32>
    %53 = vector.broadcast %52 : vector<8x1x128xf32> to vector<8x8x128xf32>
    %54 = arith.mulf %53, %50 : vector<8x8x128xf32>
    %cst_31 = arith.constant dense<0.000000e+00> : vector<8x8xf32>
    %55 = vector.multi_reduction <add>, %54, %cst_31 [2] : vector<8x8x128xf32> to vector<8x8xf32>
    %cst_32 = arith.constant dense<0xFF800000> : vector<8xf32>
    %56 = vector.multi_reduction <maximumf>, %55, %cst_32 [1] : vector<8x8xf32> to vector<8xf32>
    %57 = vector.shape_cast %56 : vector<8xf32> to vector<8x1xf32>
    %58 = vector.broadcast %57 : vector<8x1xf32> to vector<8x8xf32>
    %59 = arith.subf %55, %58 : vector<8x8xf32>
    %60 = math.exp %59 : vector<8x8xf32>
    %cst_33 = arith.constant dense<0.000000e+00> : vector<8xf32>
    %61 = vector.multi_reduction <add>, %60, %cst_33 [1] : vector<8x8xf32> to vector<8xf32>
    %62 = vector.shape_cast %61 : vector<8xf32> to vector<8x1xf32>
    %63 = vector.broadcast %62 : vector<8x1xf32> to vector<8x8xf32>
    %64 = arith.divf %60, %63 : vector<8x8xf32>
    %65 = vector.shape_cast %64 : vector<8x8xf32> to vector<8x8x1xf32>
    %66 = vector.broadcast %65 : vector<8x8x1xf32> to vector<8x8x128xf32>
    %67 = arith.mulf %66, %51 : vector<8x8x128xf32>
    %cst_34 = arith.constant dense<0.000000e+00> : vector<8x128xf32>
    %68 = vector.multi_reduction <add>, %67, %cst_34 [1] : vector<8x8x128xf32> to vector<8x128xf32>
    %c128 = arith.constant 128 : index
    %c0_35 = arith.constant 0 : index
    %69 = vector.load %arg10[%c128, %c0_35] : memref<256x128xf32, #tpu.memory_space<vmem>>, vector<128x128xf32>
    %cst_36 = arith.constant dense<0.000000e+00> : vector<8x128xf32>
    %70 = tpu.matmul %68, %69, %cst_36 {dimension_numbers = #tpu.dot_dimension_numbers<[1], [0], [0], [1], [0, 0, 1, 1], [], []>} : vector<8x128xf32>, vector<128x128xf32>, vector<8x128xf32> -> vector<8x128xf32>
    %71 = arith.addf %48, %70 : vector<8x128xf32>
    %c0_37 = arith.constant 0 : index
    %c0_38 = arith.constant 0 : index
    %72 = vector.load %arg12[%c0_37, %c0_38] : memref<8x128xf32, #tpu.memory_space<vmem>>, vector<8x128xf32>
    tpu.vector_store %arg12[%c0_37, %c0_38], %71 {strides = array<i32>} : memref<8x128xf32, #tpu.memory_space<vmem>>, vector<8x128xf32>,
    return
  }
  func.func @transform_0(%arg0: i32) -> (i32, i32) {
    %c0_i32 = arith.constant 0 : i32
    %c0_i32_0 = arith.constant 0 : i32
    return %arg0, %c0_i32 : i32, i32
  }
  func.func @transform_1(%arg0: i32) -> (i32, i32, i32) {
    %c0_i32 = arith.constant 0 : i32
    %c0_i32_0 = arith.constant 0 : i32
    %c0_i32_1 = arith.constant 0 : i32
    return %arg0, %c0_i32, %c0_i32_0 : i32, i32, i32
  }
  func.func @transform_2(%arg0: i32) -> (i32, i32, i32) {
    %c0_i32 = arith.constant 0 : i32
    %c0_i32_0 = arith.constant 0 : i32
    %c0_i32_1 = arith.constant 0 : i32
    return %arg0, %c0_i32, %c0_i32_0 : i32, i32, i32
  }
  func.func @transform_3(%arg0: i32) -> (i32, i32) {
    %c0_i32 = arith.constant 0 : i32
    %c0_i32_0 = arith.constant 0 : i32
    %c0_i32_1 = arith.constant 0 : i32
    return %c0_i32, %c0_i32_0 : i32, i32
  }
  func.func @transform_4(%arg0: i32) -> (i32, i32) {
    %c0_i32 = arith.constant 0 : i32
    %c0_i32_0 = arith.constant 0 : i32
    %c0_i32_1 = arith.constant 0 : i32
    return %c0_i32, %c0_i32_0 : i32, i32
  }
  func.func @transform_5(%arg0: i32) -> (i32, i32) {
    %c0_i32 = arith.constant 0 : i32
    %c0_i32_0 = arith.constant 0 : i32
    %c0_i32_1 = arith.constant 0 : i32
    return %c0_i32, %c0_i32_0 : i32, i32
  }
  func.func @transform_6(%arg0: i32) -> (i32, i32) {
    %c0_i32 = arith.constant 0 : i32
    %c0_i32_0 = arith.constant 0 : i32
    %c0_i32_1 = arith.constant 0 : i32
    return %c0_i32, %c0_i32_0 : i32, i32
  }
  func.func @transform_7(%arg0: i32) -> (i32, i32) {
    %c0_i32 = arith.constant 0 : i32
    %c0_i32_0 = arith.constant 0 : i32
    %c0_i32_1 = arith.constant 0 : i32
    return %c0_i32, %c0_i32_0 : i32, i32
  }
  func.func @transform_8(%arg0: i32) -> (i32, i32) {
    %c0_i32 = arith.constant 0 : i32
    %c0_i32_0 = arith.constant 0 : i32
    %c0_i32_1 = arith.constant 0 : i32
    return %c0_i32, %c0_i32_0 : i32, i32
  }
  func.func @transform_9(%arg0: i32) -> (i32, i32) {
    %c0_i32 = arith.constant 0 : i32
    %c0_i32_0 = arith.constant 0 : i32
    %c0_i32_1 = arith.constant 0 : i32
    return %c0_i32, %c0_i32_0 : i32, i32
  }
  func.func @transform_10(%arg0: i32) -> (i32, i32) {
    %c0_i32 = arith.constant 0 : i32
    %c0_i32_0 = arith.constant 0 : i32
    %c0_i32_1 = arith.constant 0 : i32
    return %c0_i32, %c0_i32_0 : i32, i32
  }
  func.func @transform_11(%arg0: i32) -> (i32, i32) {
    %c0_i32 = arith.constant 0 : i32
    %c0_i32_0 = arith.constant 0 : i32
    return %arg0, %c0_i32 : i32, i32
  }
}

</mosaic_0001>

<bundles_post_ra>
// kernel: tpu_custom_call.1
= control target key start
LH: loop header
LB: loop body
LE: loop exit
PB: predicated region body
PF: predicated region fallthrough
CT: control target
= control target key end

     0   :  { %16 = vsyncpa [#allocation3], 0  ;;  %s2846_s0 = inlined_call_operand.hbm [shape: f32[8,32], index: 0, kind: input, shape index: {}]   ;;  %s2847_s1 = inlined_call_operand.hbm [shape: f32[8,8,32], index: 1, kind: input, shape index: {}]   ;;  %s2848_s2 = inlined_call_operand.hbm [shape: f32[8,8,32], index: 2, kind: input, shape index: {}]   ;;  %s2849_s3 = inlined_call_operand.hbm [shape: f32[32,256], index: 3, kind: input, shape index: {}]   ;;  %s2850_s4 = inlined_call_operand.vmem [shape: f32[1,256], index: 4, kind: input, shape index: {}]   ;;  %s2851_s5 = inlined_call_operand.hbm [shape: f32[32,256], index: 5, kind: input, shape index: {}]   ;;  %s2852_s6 = inlined_call_operand.vmem [shape: f32[1,256], index: 6, kind: input, shape index: {}]   ;;  %s2853_s7 = inlined_call_operand.hbm [shape: f32[32,256], index: 7, kind: input, shape index: {}]   ;;  %s2854_s8 = inlined_call_operand.vmem [shape: f32[1,256], index: 8, kind: input, shape index: {}]   ;;  %s2855_s9 = inlined_call_operand.hbm [shape: f32[256,128], index: 9, kind: input, shape index: {}]   ;;  %s2856_s10 = inlined_call_operand.vmem [shape: f32[1,128], index: 10, kind: input, shape index: {}]   ;;  %s2857_s11 = inlined_call_operand.hbm [shape: f32[8,128], index: 11, kind: output, shape index: {}]  }
   0x1   :  { %17 = vsyncpa [#allocation6], 0 }
   0x2   :  { %18 = vsyncpa [#allocation9], 0 }
   0x3   :  { %19 = vsyncpa [#allocation12], 0 }
   0x4   :  { %20 = vsyncpa [#allocation4], 0  ;;  %s2182_s17 = smov [#allocation5]   ;;  %s1996_s21 = scalar_lea.hbm %s2847_s1, 1024 }
   0x5   :  { %s36_s18 = sshll.u32 %s2182_s17, 4  ;;  %p1997_p0 = scmp.ne.s32.totalorder %s2847_s1, %s1996_s21  ;;  %s37_s18 = int_to_ptr.vmem [resolvable:$true] %s36_s18 }
   0x6   :  { %p2000_p1 = scmp.lt.u32.totalorder %s1996_s21, %s2847_s1 }
   0x8   :  { %p2002_p2 = pnand %p2000_p1, %p1997_p0 }
   0xa   :  { %2005 = shalt.err (!%p2002_p2)
}
   0xb   :  { %s2006_s26 = scalar_lea.vmem %s37_s18, 1024  ;;  %p2011_p4 = scmp.lt.s32.totalorder %s37_s18, %s37_s18 }
   0xc   :  { %p2007_p3 = scmp.ne.s32.totalorder %s37_s18, %s2006_s26  ;;  %p2012_p5 = scmp.lt.s32.totalorder %s2006_s26, %s2006_s26 }
   0xe   :  { %p2013_p6 = por %p2012_p5, %p2011_p4 }
  0x10   :  { %p2014_p7 = pnand %p2013_p6, %p2007_p3 }
  0x12   :  { %2017 = shalt.err (!%p2014_p7)
}
  0x13   :  { %s2183_s27 = smov 128   ;;  %s2184_s28 = smov 8  }
  0x14   :  { %42 = dma.hbm_to_vmem [thread:$0]  %s2847_s1, 1024, %s37_s18, [#allocation6], %s2183_s27, %s2183_s27, %s2184_s28  }
  0x15   :  { %s2185_s12 = smov [#allocation8]   ;;  %s2018_s16 = scalar_lea.hbm %s2849_s3, 1024 }
  0x16   :  { %s60_s13 = sshll.u32 %s2185_s12, 4  ;;  %p2019_p8 = scmp.ne.s32.totalorder %s2849_s3, %s2018_s16  ;;  %s61_s13 = int_to_ptr.vmem [resolvable:$true] %s60_s13 }
  0x17   :  { %p2022_p9 = scmp.lt.u32.totalorder %s2018_s16, %s2849_s3 }
  0x19   :  { %p2024_p10 = pnand %p2022_p9, %p2019_p8 }
  0x1b   :  { %2027 = shalt.err (!%p2024_p10)
}
  0x1c   :  { %s2028_s22 = scalar_lea.vmem %s61_s13, 1024  ;;  %p2033_p12 = scmp.lt.s32.totalorder %s61_s13, %s61_s13 }
  0x1d   :  { %p2029_p11 = scmp.ne.s32.totalorder %s61_s13, %s2028_s22  ;;  %p2034_p13 = scmp.lt.s32.totalorder %s2028_s22, %s2028_s22 }
  0x1f   :  { %p2035_p0 = por %p2034_p13, %p2033_p12 }
  0x21   :  { %p2036_p1 = pnand %p2035_p0, %p2029_p11 }
  0x23   :  { %2039 = shalt.err (!%p2036_p1)
}
  0x24   :  { %s2186_s1 = smov 256   ;;  %s2187_s18 = smov 16  }
  0x25   :  { %66 = dma.hbm_to_vmem [thread:$0]  %s2849_s3, 1024, %s61_s13, [#allocation9], %s2186_s1, %s2186_s1, %s2187_s18  }
  0x26   :  { %s2188_s25 = smov [#allocation11]   ;;  %s2189_s29 = smov [#allocation2]  }
  0x27   :  { %s88_s26 = sshll.u32 %s2188_s25, 4  ;;  %s27_s30 = sshll.u32 %s2189_s29, 4  ;;  %s89_s26 = int_to_ptr.vmem [resolvable:$true] %s88_s26  ;;  %s28_s30 = int_to_ptr.vmem [resolvable:$true] %s27_s30 }
  0x28   :  { %s2040_s15 = scalar_lea.hbm %s2853_s7, 1024 }
  0x29   :  { %p2041_p2 = scmp.ne.s32.totalorder %s2853_s7, %s2040_s15  ;;  %p2044_p3 = scmp.lt.u32.totalorder %s2040_s15, %s2853_s7 }
  0x2b   :  { %p2046_p4 = pnand %p2044_p3, %p2041_p2 }
  0x2d   :  { %2049 = shalt.err (!%p2046_p4)
}
  0x2e   :  { %s2050_s3 = scalar_lea.vmem %s89_s26, 1024  ;;  %p2055_p6 = scmp.lt.s32.totalorder %s89_s26, %s89_s26 }
  0x2f   :  { %p2051_p5 = scmp.ne.s32.totalorder %s89_s26, %s2050_s3  ;;  %p2056_p7 = scmp.lt.s32.totalorder %s2050_s3, %s2050_s3 }
  0x31   :  { %p2057_p8 = por %p2056_p7, %p2055_p6 }
  0x33   :  { %p2058_p9 = pnand %p2057_p8, %p2051_p5 }
  0x35   :  { %2061 = shalt.err (!%p2058_p9)
}
  0x36   :  { %94 = dma.hbm_to_vmem [thread:$0]  %s2853_s7, 1024, %s89_s26, [#allocation12], %s2186_s1, %s2186_s1, %s2187_s18  }
  0x37   :  { %s2062_s24 = scalar_lea.hbm %s2846_s0, 128 }
  0x38   :  { %p2063_p10 = scmp.ne.s32.totalorder %s2846_s0, %s2062_s24  ;;  %p2066_p11 = scmp.lt.u32.totalorder %s2062_s24, %s2846_s0 }
  0x3a   :  { %p2068_p12 = pnand %p2066_p11, %p2063_p10 }
  0x3c   :  { %2071 = shalt.err (!%p2068_p12)
}
  0x3d   :  { %s2072_s15 = scalar_lea.vmem %s28_s30, 128  ;;  %p2077_p0 = scmp.lt.s32.totalorder %s28_s30, %s28_s30 }
  0x3e   :  { %p2073_p13 = scmp.ne.s32.totalorder %s28_s30, %s2072_s15  ;;  %p2078_p1 = scmp.lt.s32.totalorder %s2072_s15, %s2072_s15 }
  0x40   :  { %p2079_p2 = por %p2078_p1, %p2077_p0 }
  0x42   :  { %p2080_p3 = pnand %p2079_p2, %p2073_p13 }
  0x44   :  { %2083 = shalt.err (!%p2080_p3)
}
  0x45   :  { %30 = dma.hbm_to_vmem [thread:$0]  %s2846_s0, 128, %s28_s30, [#allocation3]  }
  0x46   :  { %s2190_s16 = smov [#allocation7]   ;;  %s2191_s19 = smov [#allocation10]  }
  0x47   :  { %s48_s17 = sshll.u32 %s2190_s16, 4  ;;  %s74_s20 = sshll.u32 %s2191_s19, 4  ;;  %s49_s17 = int_to_ptr.vmem [resolvable:$true] %s48_s17  ;;  %s2316_s20 = int_to_ptr.vmem [resolvable:$true] %s74_s20 }
  0x48   :  { %s2084_s21 = scalar_lea.hbm %s2848_s2, 1024 }
  0x49   :  { %p2085_p4 = scmp.ne.s32.totalorder %s2848_s2, %s2084_s21  ;;  %p2088_p5 = scmp.lt.u32.totalorder %s2084_s21, %s2848_s2 }
  0x4b   :  { %p2090_p6 = pnand %p2088_p5, %p2085_p4 }
  0x4d   :  { %2093 = shalt.err (!%p2090_p6)
}
  0x4e   :  { %s2094_s0 = scalar_lea.vmem %s49_s17, 1024  ;;  %p2099_p8 = scmp.lt.s32.totalorder %s49_s17, %s49_s17 }
  0x4f   :  { %p2095_p7 = scmp.ne.s32.totalorder %s49_s17, %s2094_s0  ;;  %p2100_p9 = scmp.lt.s32.totalorder %s2094_s0, %s2094_s0 }
  0x51   :  { %p2101_p10 = por %p2100_p9, %p2099_p8 }
  0x53   :  { %p2102_p11 = pnand %p2101_p10, %p2095_p7 }
  0x55   :  { %2105 = shalt.err (!%p2102_p11)
}
  0x56   :  { %54 = dma.hbm_to_vmem [thread:$0]  %s2848_s2, 1024, %s49_s17, [#allocation6], %s2183_s27, %s2183_s27, %s2184_s28  }
  0x57   :  { %s2106_s15 = scalar_lea.hbm %s2851_s5, 1024 }
  0x58   :  { %p2107_p12 = scmp.ne.s32.totalorder %s2851_s5, %s2106_s15  ;;  %p2110_p13 = scmp.lt.u32.totalorder %s2106_s15, %s2851_s5 }
  0x5a   :  { %p2112_p0 = pnand %p2110_p13, %p2107_p12 }
  0x5c   :  { %2115 = shalt.err (!%p2112_p0)
}
  0x5d   :  { %s2116_s3 = scalar_lea.vmem %s2316_s20, 1024  ;;  %p2121_p2 = scmp.lt.s32.totalorder %s2316_s20, %s2316_s20 }
  0x5e   :  { %p2117_p1 = scmp.ne.s32.totalorder %s2316_s20, %s2116_s3  ;;  %p2122_p3 = scmp.lt.s32.totalorder %s2116_s3, %s2116_s3 }
  0x60   :  { %p2123_p4 = por %p2122_p3, %p2121_p2 }
  0x62   :  { %p2124_p5 = pnand %p2123_p4, %p2117_p1 }
  0x64   :  { %2127 = shalt.err (!%p2124_p5)
}
  0x65   :  { %80 = dma.hbm_to_vmem [thread:$0]  %s2851_s5, 1024, %s2316_s20, [#allocation9], %s2186_s1, %s2186_s1, %s2187_s18  }
  0x66   :  { %s2192_s13 = smov [#allocation13]   ;;  %s2128_s24 = scalar_lea.hbm %s2855_s9, 4096 }
  0x67   :  { %s102_s21 = sshll.u32 %s2192_s13, 4  ;;  %p2129_p6 = scmp.ne.s32.totalorder %s2855_s9, %s2128_s24  ;;  %s103_s21 = int_to_ptr.vmem [resolvable:$true] %s102_s21 }
  0x68   :  { %p2132_p7 = scmp.lt.u32.totalorder %s2128_s24, %s2855_s9 }
  0x6a   :  { %p2134_p8 = pnand %p2132_p7, %p2129_p6 }
  0x6c   :  { %2137 = shalt.err (!%p2134_p8)
}
  0x6d   :  { %s2138_s12 = scalar_lea.vmem %s103_s21, 4096  ;;  %p2143_p10 = scmp.lt.s32.totalorder %s103_s21, %s103_s21 }
  0x6e   :  { %p2139_p9 = scmp.ne.s32.totalorder %s103_s21, %s2138_s12  ;;  %p2144_p11 = scmp.lt.s32.totalorder %s2138_s12, %s2138_s12 }
  0x70   :  { %p2145_p12 = por %p2144_p11, %p2143_p10 }
  0x72   :  { %p2146_p13 = pnand %p2145_p12, %p2139_p9 }
  0x74   :  { %2149 = shalt.err (!%p2146_p13)
}
  0x75   :  { %108 = dma.hbm_to_vmem [thread:$0]  %s2855_s9, 4096, %s103_s21, [#allocation12], %s2183_s27, %s2183_s27, %s2184_s28  }
  0x76   :  { %2172 = dma.done.wait [#allocation3], 128  }
  0x77   :  { %2173 = vsyncadd [#allocation3], 4294967168 }
  0x78   :  { %2174 = dma.done.wait [#allocation6], 2048  }
  0x79   :  { %2175 = vsyncadd [#allocation6], 4294965248 }
  0x7a   :  { %2176 = dma.done.wait [#allocation9], 2048  }
  0x7b   :  { %2177 = vsyncadd [#allocation9], 4294965248 }
  0x7c   :  { %2178 = dma.done.wait [#allocation12], 5120  }
  0x7d   :  { %2179 = vsyncadd [#allocation12], 4294962176  ;;  %v2193_v0 = vmov 0.0   ;;  %v150_v1 = vld [vmem:[#allocation8 + $0x8] sm:$0xff]  ;;  %v152_v2 = vld [vmem:[#allocation8 + $0x18] sm:$0xff]  ;;  %vm169_vm0 = vcmask 261120   ;;  %v159_v34 = vlaneseq }
  0x7e   :  { %237 = vmatprep.mubr.f32.mxu0 %v2193_v0  ;;  %352 = vmatprep.mubr.f32.mxu1 %v2193_v0  ;;  %v245_v3 = vld [vmem:[#allocation10 + $0x8] sm:$0xff]  ;;  %v1839_v4 = vpack.c.bf16 %v152_v2, %v150_v1  ;;  %v247_v5 = vld [vmem:[#allocation10 + $0x18] sm:$0xff]  ;;  %v149_v6 = vld [vmem:[#allocation8] sm:$0xff]  ;;  %v2194_v36 = vmov 1966171168   ;;  %vm722_vm1 = vcmask 1041409  }
  0x7f   :  { %v151_v7 = vld [vmem:[#allocation8 + $0x10] sm:$0xff]  ;;  %v1847_v8 = vpack.c.bf16 %v247_v5, %v245_v3  ;;  %v244_v10 = vld [vmem:[#allocation10] sm:$0xff]  ;;  %v154_v12 = vld [vmem:[#allocation8 + $0x28] sm:$0xff]  ;;  %v2388_v35 = vshrl.u32 %v159_v34, 7  ;;  %v569_v37 = vunpack.c.l.s4 %v2194_v36  ;;  %vm724_vm2 = vcmask 1042434   ;;  %s2198_s14 = smov [#allocation14]  }
  0x80   :  { %v1841_v9 = vpack.c.bf16 %v151_v7, %v149_v6  ;;  %v246_v11 = vld [vmem:[#allocation10 + $0x10] sm:$0xff]  ;;  %1840 = vmatprep.subr.bf16.mxu0 %v1839_v4  ;;  %v156_v14 = vld [vmem:[#allocation8 + $0x38] sm:$0xff]  ;;  %v249_v15 = vld [vmem:[#allocation10 + $0x28] sm:$0xff]  ;;  %vm726_vm3 = vcmask 1043459   ;;  %vm728_vm4 = vcmask 1044484   ;;  %vm730_vm5 = vcmask 1045509  }
  0x81   :  { %v1849_v13 = vpack.c.bf16 %v246_v11, %v244_v10  ;;  %v251_v16 = vld [vmem:[#allocation10 + $0x38] sm:$0xff]  ;;  %1848 = vmatprep.subr.bf16.mxu1 %v1847_v8  ;;  %v1843_v17 = vpack.c.bf16 %v156_v14, %v154_v12  ;;  %v153_v19 = vld [vmem:[#allocation8 + $0x20] sm:$0xff]  ;;  %v155_v20 = vld [vmem:[#allocation8 + $0x30] sm:$0xff]  ;;  %v2391_v38 = vsub.s32 0, %v2388_v35  ;;  %v2397_v40 = vsub.s32 1, %v2388_v35  ;;  %s1705_s15 = sshll.u32 %s2198_s14, 4  ;;  %s1706_s15 = int_to_ptr.vmem [resolvable:$true] %s1705_s15 }
  0x82   :  { %1842 = vmatpush1.bf16.msra.mxu0 %v1841_v9  ;;  %v1851_v18 = vpack.c.bf16 %v251_v16, %v249_v15  ;;  %v248_v21 = vld [vmem:[#allocation10 + $0x20] sm:$0xff]  ;;  %v1845_v22 = vpack.c.bf16 %v155_v20, %v153_v19  ;;  %v250_v23 = vld [vmem:[#allocation10 + $0x30] sm:$0xff]  ;;  %v132_v25 = vld [vmem:[#allocation2] sm:$0xff]  ;;  %v570_v41 = vunpack.c.0.s8 %v569_v37  ;;  %vm732_vm6 = vcmask 1046534   ;;  %s2150_s7 = scalar_lea.vmem %s1706_s15, 128  ;;  %p2155_p1 = scmp.lt.s32.totalorder %s1706_s15, %s1706_s15 }
  0x83   :  { %1850 = vmatpush1.bf16.msra.mxu1 %v1849_v13  ;;  %1844 = vmatprep.subr.bf16.mxu0 %v1843_v17  ;;  %v1853_v24 = vpack.c.bf16 %v250_v23, %v248_v21  ;;  %v133_v26 = vld [vmem:[#allocation5] sm:$0xff]  ;;  %v134_v27 = vld [vmem:[#allocation5 + $0x8] sm:$0xff]  ;;  %v135_v28 = vld [vmem:[#allocation5 + $0x10] sm:$0xff]  ;;  %vm734_vm7 = vcmask 1047559   ;;  %vm737_vm8 = vcmask 64512   ;;  %vm2197_vm9 = vmmov 0   ;;  %p2151_p0 = scmp.ne.s32.totalorder %s1706_s15, %s2150_s7  ;;  %p2156_p2 = scmp.lt.s32.totalorder %s2150_s7, %s2150_s7 }
  0x84   :  { %1852 = vmatprep.subr.bf16.mxu1 %v1851_v18  ;;  %v136_v29 = vld [vmem:[#allocation5 + $0x18] sm:$0xff]  ;;  %v137_v30 = vld [vmem:[#allocation5 + $0x20] sm:$0xff]  ;;  %v138_v31 = vld [vmem:[#allocation5 + $0x28] sm:$0xff]  ;;  %v2402_v44 = vsub.s32 %v570_v41, %v2388_v35 }
  0x85   :  { %v139_v32 = vld [vmem:[#allocation5 + $0x30] sm:$0xff]  ;;  %v140_v33 = vld [vmem:[#allocation5 + $0x38] sm:$0xff]  ;;  %p2157_p3 = por %p2156_p2, %p2155_p1 }
  0x86   :  { %1846 = vmatpush1.bf16.msra.mxu0 %v1845_v22  ;;  %v157_v39 = vld [vmem:[%s2850_s4] sm:$0x3] }
  0x87   :  { %1854 = vmatpush1.bf16.msra.mxu1 %v1853_v24  ;;  %v162_v42 = vrot.slane %v157_v39, %v2391_v38  ;;  %v166_v43 = vrot.slane %v157_v39, %v2397_v40  ;;  %v252_v45 = vld [vmem:[%s2852_s6] sm:$0x3]  ;;  %p2158_p4 = pnand %p2157_p3, %p2151_p0 }
  0x88   :  { %v2408_v51 = vrot.slane %v252_v45, %v2391_v38  ;;  %v2411_v52 = vrot.slane %v252_v45, %v2397_v40 }
  0x89   :  { %1717 = vmatmul.mubr.msk.f32.vlgmr.msra.gmra.mrb[0].mxu0 %vm169_vm0, %v132_v25 }
  0x8a   :  { %1718 = vmatmul.mubr.msk.f32.vlgmr.msra.gmra.mrb[0].mxu1 %vm169_vm0, %v133_v26  ;;  %509 = vmatprep.mubr.f32.mxu0 %v2193_v0 }
  0x8b   :  { %358 = vmatprep.mubr.f32.mxu1 %v2193_v0 }
  0x8e   :  { %1719 = vmatmul.mubr.msk.f32.gmra.mrb[2].mxu1 %vm169_vm0, %v134_v27 }
  0x8f   :  { %364 = vmatprep.mubr.f32.mxu1 %v2193_v0 }
  0x92   :  { %1720 = vmatmul.mubr.msk.f32.gmra.mrb[4].mxu1 %vm169_vm0, %v135_v28 }
  0x93   :  { %370 = vmatprep.mubr.f32.mxu1 %v2193_v0 }
  0x96   :  { %1721 = vmatmul.mubr.msk.f32.gmra.mrb[6].mxu1 %vm169_vm0, %v136_v29 }
  0x97   :  { %376 = vmatprep.mubr.f32.mxu1 %v2193_v0 }
  0x9a   :  { %1722 = vmatmul.mubr.msk.f32.gmra.mrb[8].mxu1 %vm169_vm0, %v137_v30 }
  0x9b   :  { %382 = vmatprep.mubr.f32.mxu1 %v2193_v0 }
  0x9e   :  { %1723 = vmatmul.mubr.msk.f32.gmra.mrb[10].mxu1 %vm169_vm0, %v138_v31 }
  0x9f   :  { %388 = vmatprep.mubr.f32.mxu1 %v2193_v0 }
  0xa2   :  { %1724 = vmatmul.mubr.msk.f32.gmra.mrb[12].mxu1 %vm169_vm0, %v139_v32 }
  0xa3   :  { %394 = vmatprep.mubr.f32.mxu1 %v2193_v0 }
  0xa6   :  { %1725 = vmatmul.mubr.msk.f32.gmra.mrb[14].mxu1 %vm169_vm0, %v140_v33 }
  0xa7   :  { %1836 = vmatprep.mubr.msk.f32.mxu1 %vm2197_vm9, %v2193_v0 }
 0x15c   :  { %v239_v46 = vpop.f32.mrb[0].mxu0 }
 0x15d   :  { %v240_v47 = vadd.f32 %v239_v46, %v162_v42  ;;  %v241_v48 = vpop.f32.mrb[1].mxu0  ;;  %v354_v49 = vpop.f32.mrb[0].mxu1 }
 0x15e   :  { %v242_v50 = vadd.f32 %v241_v48, %v166_v43  ;;  %v356_v53 = vpop.f32.mrb[1].mxu1  ;;  %v355_v62 = vadd.f32 %v354_v49, %v2408_v51 }
 0x15f   :  { %v567_v54 = vcombine.high %v240_v47, %v240_v47  ;;  %v574_v55 = vrot.slane %v240_v47, %v2402_v44  ;;  %v357_v63 = vadd.f32 %v356_v53, %v2411_v52 }
 0x160   :  { %v1145_v56 = vrot.slane %v242_v50, %v2402_v44  ;;  %v1138_v3 = vcombine.high %v242_v50, %v242_v50 }
 0x161   :  { %v582_v57 = vcombine.high %v574_v55, %v574_v55  ;;  %v360_v58 = vpop.f32.mrb[2].mxu1  ;;  %v590_v59 = vrot.slane %v574_v55, %v2402_v44  ;;  %v581_v2 = vrot.slane %v567_v54, %v2402_v44 }
 0x162   :  { %v1153_v60 = vcombine.high %v1145_v56, %v1145_v56  ;;  %v1161_v61 = vrot.slane %v1145_v56, %v2402_v44  ;;  %v362_v1 = vpop.f32.mrb[3].mxu1  ;;  %v361_v6 = vadd.f32 %v360_v58, %v2408_v51  ;;  %v1152_v20 = vrot.slane %v1138_v3, %v2402_v44 }
 0x163   :  { %v619_v4 = vrot.slane %v590_v59, %v2391_v38  ;;  %v612_v5 = vcombine.high %v590_v59, %v590_v59  ;;  %v604_v9 = vrot.slane %v582_v57, %v2402_v44  ;;  %v363_v10 = vadd.f32 %v362_v1, %v2411_v52 }
 0x164   :  { %v1190_v7 = vrot.slane %v1161_v61, %v2391_v38  ;;  %v1175_v8 = vrot.slane %v1153_v60, %v2402_v44  ;;  %v1183_v14 = vcombine.high %v1161_v61, %v1161_v61  ;;  %v583_v30 = vcombine.high %v581_v2, %v581_v2 }
 0x165   :  { %v366_v11 = vpop.f32.mrb[4].mxu1  ;;  %v656_v12 = vmul.f32 %v619_v4, %v355_v62  ;;  %v627_v13 = vrot.slane %v612_v5, %v2391_v38  ;;  %v623_v19 = vrot.slane %v604_v9, %v2391_v38  ;;  %v614_v23 = vcombine.high %v604_v9, %v604_v9 }
 0x166   :  { %v367_v15 = vadd.f32 %v366_v11, %v2408_v51  ;;  %v368_v16 = vpop.f32.mrb[5].mxu1  ;;  %v1227_v17 = vmul.f32 %v1190_v7, %v357_v63  ;;  %v1194_v18 = vrot.slane %v1175_v8, %v2391_v38  ;;  %v1198_v22 = vrot.slane %v1183_v14, %v2391_v38 }
 0x167   :  { %v369_v21 = vadd.f32 %v368_v16, %v2411_v52  ;;  %664 = vadd.xlane.f32.xlu0 %v656_v12  ;;  %v657_v26 = vmul.f32 %v623_v19, %v361_v6  ;;  %v1185_v29 = vcombine.high %v1175_v8, %v1175_v8  ;;  %v597_v33 = vrot.slane %v581_v2, %v2402_v44 }
 0x168   :  { %v658_v24 = vmul.f32 %v627_v13, %v367_v15  ;;  %v1228_v25 = vmul.f32 %v1194_v18, %v363_v10  ;;  %v631_v36 = vrot.slane %v614_v23, %v2391_v38  ;;  %v1154_v37 = vcombine.high %v1152_v20, %v1152_v20 }
 0x169   :  { %v372_v27 = vpop.f32.mrb[6].mxu1  ;;  %v1229_v28 = vmul.f32 %v1198_v22, %v369_v21  ;;  %v1202_v41 = vrot.slane %v1185_v29, %v2391_v38  ;;  %v1168_v42 = vrot.slane %v1152_v20, %v2402_v44  ;;  %v635_v49 = vrot.slane %v597_v33, %v2391_v38 }
 0x16a   :  { %v373_v31 = vadd.f32 %v372_v27, %v2408_v51  ;;  %v374_v32 = vpop.f32.mrb[7].mxu1  ;;  %668 = vadd.xlane.f32.xlu1 %v658_v24  ;;  %v611_v50 = vrot.slane %v583_v30, %v2402_v44  ;;  %v1182_v55 = vrot.slane %v1154_v37, %v2402_v44  ;;  %v613_v62 = vcombine.high %v597_v33, %v597_v33 }
 0x16b   :  { %v375_v39 = vadd.f32 %v374_v32, %v2411_v52  ;;  %1235 = vadd.xlane.f32.xlu0 %v1227_v17  ;;  %v1206_v54 = vrot.slane %v1168_v42, %v2391_v38  ;;  %v1184_v2 = vcombine.high %v1168_v42, %v1168_v42  ;;  %v689_v24 = vand.u32 127, %v159_v34 }
 0x16c   :  { %v659_v43 = vmul.f32 %v631_v36, %v373_v31  ;;  %v639_v61 = vrot.slane %v611_v50, %v2391_v38  ;;  %v1210_v1 = vrot.slane %v1182_v55, %v2391_v38  ;;  %v643_v7 = vrot.slane %v613_v62, %v2391_v38 }
 0x16d   :  { %v378_v45 = vpop.f32.mrb[8].mxu1  ;;  %v1230_v46 = vmul.f32 %v1202_v41, %v375_v39  ;;  %v615_v8 = vcombine.high %v611_v50, %v611_v50  ;;  %v1214_v10 = vrot.slane %v1184_v2, %v2391_v38  ;;  %v1186_v11 = vcombine.high %v1182_v55, %v1182_v55 }
 0x16e   :  { %v379_v47 = vadd.f32 %v378_v45, %v2408_v51  ;;  %v380_v48 = vpop.f32.mrb[9].mxu1  ;;  %1237 = vadd.xlane.f32.xlu1 %v1228_v25 }
 0x16f   :  { %v381_v53 = vadd.f32 %v380_v48, %v2411_v52  ;;  %666 = vadd.xlane.f32.xlu0 %v657_v26  ;;  %v647_v17 = vrot.slane %v615_v8, %v2391_v38  ;;  %v1218_v19 = vrot.slane %v1186_v11, %v2391_v38  ;;  %v2469_v26 = vsub.s32 %v689_v24, %v2388_v35 }
 0x170   :  { %v660_v56 = vmul.f32 %v635_v49, %v379_v47 }
 0x171   :  { %v384_v57 = vpop.f32.mrb[10].mxu1  ;;  %v1231_v58 = vmul.f32 %v1206_v54, %v381_v53 }
 0x172   :  { %v385_v59 = vadd.f32 %v384_v57, %v2408_v51  ;;  %v386_v60 = vpop.f32.mrb[11].mxu1  ;;  %1239 = vadd.xlane.f32.xlu1 %v1229_v28 }
 0x173   :  { %v387_v63 = vadd.f32 %v386_v60, %v2411_v52  ;;  %672 = vadd.xlane.f32.xlu0 %v660_v56 }
 0x174   :  { %v661_v3 = vmul.f32 %v639_v61, %v385_v59 }
 0x175   :  { %v390_v4 = vpop.f32.mrb[12].mxu1  ;;  %v1232_v5 = vmul.f32 %v1210_v1, %v387_v63 }
 0x176   :  { %v391_v44 = vadd.f32 %v390_v4, %v2408_v51  ;;  %v392_v6 = vpop.f32.mrb[13].mxu1  ;;  %670 = vadd.xlane.f32.xlu1 %v659_v43 }
 0x177   :  { %v393_v9 = vadd.f32 %v392_v6, %v2411_v52  ;;  %674 = vadd.xlane.f32.xlu0 %v661_v3 }
 0x178   :  { %v662_v12 = vmul.f32 %v643_v7, %v391_v44 }
 0x179   :  { %v396_v13 = vpop.f32.mrb[14].mxu1  ;;  %v1233_v14 = vmul.f32 %v1214_v10, %v393_v9 }
 0x17a   :  { %v397_v15 = vadd.f32 %v396_v13, %v2408_v51  ;;  %v398_v16 = vpop.f32.mrb[15].mxu1  ;;  %1241 = vadd.xlane.f32.xlu1 %v1230_v46  ;;  %v2533_v13 = vsub.s32 2, %v2388_v35 }
 0x17b   :  { %v399_v18 = vadd.f32 %v398_v16, %v2411_v52  ;;  %676 = vadd.xlane.f32.xlu0 %v662_v12  ;;  %v2195_v12 = vmov 0  }
 0x17c   :  { %v663_v20 = vmul.f32 %v647_v17, %v397_v15  ;;  %1931 = vset.pattern.permute.xlu1 %v2195_v12  ;;  %1930 = vset.pattern.permute.xlu0 %v2195_v12 }
 0x17d   :  { %v1234_v21 = vmul.f32 %v1218_v19, %v399_v18 }
 0x17e   :  { %1243 = vadd.xlane.f32.xlu1 %v1231_v58 }
 0x17f   :  { %678 = vadd.xlane.f32.xlu0 %v663_v20 }
 0x182   :  { %1245 = vadd.xlane.f32.xlu1 %v1232_v5 }
 0x183   :  { %1247 = vadd.xlane.f32.xlu0 %v1233_v14  ;;  %v2536_v14 = vsub.s32 3, %v2388_v35 }
 0x186   :  { %1249 = vadd.xlane.f32.xlu1 %v1234_v21  ;;  %v2544_v21 = vsub.s32 4, %v2388_v35 }
 0x1f4   :  { %v2457_v22 = vpop.xlane.xlu0 %664 }
 0x1f5   :  { %v693_v30 = vrot.slane %v2457_v22, %v2469_v26 }
 0x1f7   :  { %v2459_v23 = vpop.xlane.xlu1 %668 }
 0x1f8   :  { %v2461_v51 = vpop.xlane.xlu0 %1235  ;;  %v701_v32 = vrot.slane %v2459_v23, %v2469_v26 }
 0x1f9   :  { %v1262_v53 = vrot.slane %v2461_v51, %v2469_v26 }
 0x1fb   :  { %v2464_v25 = vpop.xlane.xlu1 %1237 }
 0x1fc   :  { %v2466_v52 = vpop.xlane.xlu0 %666  ;;  %v1266_v46 = vrot.slane %v2464_v25, %v2469_v26 }
 0x1fd   :  { %v697_v27 = vrot.slane %v2466_v52, %v2469_v26 }
 0x1fe   :  { %v1291_v59 = vsel %vm722_vm1, %v1266_v46, %v1262_v53 }
 0x1ff   :  { %v2473_v28 = vpop.xlane.xlu1 %1239  ;;  %v723_v34 = vsel %vm722_vm1, %v697_v27, %v693_v30 }
 0x200   :  { %v2475_v29 = vpop.xlane.xlu0 %672  ;;  %v725_v37 = vsel %vm724_vm2, %v701_v32, %v723_v34  ;;  %v1270_v49 = vrot.slane %v2473_v28, %v2469_v26  ;;  %v2549_v32 = vsub.s32 5, %v2388_v35 }
 0x201   :  { %v709_v42 = vrot.slane %v2475_v29, %v2469_v26 }
 0x202   :  { %v1292_v61 = vsel %vm724_vm2, %v1270_v49, %v1291_v59 }
 0x203   :  { %v2480_v31 = vpop.xlane.xlu1 %670 }
 0x204   :  { %v705_v33 = vrot.slane %v2480_v31, %v2469_v26  ;;  %v2486_v36 = vpop.xlane.xlu0 %674 }
 0x205   :  { %v713_v45 = vrot.slane %v2486_v36, %v2469_v26 }
 0x206   :  { %v727_v39 = vsel %vm726_vm3, %v705_v33, %v725_v37 }
 0x207   :  { %v2490_v41 = vpop.xlane.xlu1 %1241  ;;  %v729_v48 = vsel %vm728_vm4, %v709_v42, %v727_v39  ;;  %v2560_v42 = vsub.s32 6, %v2388_v35 }
 0x208   :  { %v2494_v43 = vpop.xlane.xlu0 %676  ;;  %v1274_v54 = vrot.slane %v2490_v41, %v2469_v26  ;;  %v731_v58 = vsel %vm730_vm5, %v713_v45, %v729_v48 }
 0x209   :  { %v717_v47 = vrot.slane %v2494_v43, %v2469_v26 }
 0x20a   :  { %v1293_v1 = vsel %vm726_vm3, %v1274_v54, %v1292_v61  ;;  %v2568_v54 = vsub.s32 7, %v2388_v35 }
 0x20b   :  { %v1244_v50 = vpop.xlane.xlu1 %1243  ;;  %v733_v60 = vsel %vm732_vm6, %v717_v47, %v731_v58 }
 0x20c   :  { %v2509_v55 = vpop.xlane.xlu0 %678  ;;  %v1278_v56 = vrot.slane %v1244_v50, %v2469_v26 }
 0x20d   :  { %v721_v57 = vrot.slane %v2509_v55, %v2469_v26 }
 0x20e   :  { %v1294_v5 = vsel %vm728_vm4, %v1278_v56, %v1293_v1 }
 0x20f   :  { %v1246_v62 = vpop.xlane.xlu1 %1245  ;;  %v735_v63 = vsel %vm734_vm7, %v721_v57, %v733_v60 }
 0x210   :  { %v1282_v2 = vrot.slane %v1246_v62, %v2469_v26  ;;  %v2521_v3 = vpop.xlane.xlu0 %1247  ;;  %v738_v4 = vsel %vm737_vm8, %v735_v63, -inf }
 0x211   :  { %v1286_v44 = vrot.slane %v2521_v3, %v2469_v26  ;;  %739 = vmax.xlane.f32.xlu0 %v738_v4 }
 0x212   :  { %v1295_v6 = vsel %vm730_vm5, %v1282_v2, %v1294_v5 }
 0x213   :  { %v1250_v7 = vpop.xlane.xlu1 %1249  ;;  %v1296_v8 = vsel %vm732_vm6, %v1286_v44, %v1295_v6 }
 0x214   :  { %v1290_v9 = vrot.slane %v1250_v7, %v2469_v26 }
 0x216   :  { %v1297_v10 = vsel %vm734_vm7, %v1290_v9, %v1296_v8 }
 0x217   :  { %v1299_v11 = vsel %vm737_vm8, %v1297_v10, -inf }
 0x218   :  { %1300 = vmax.xlane.f32.xlu1 %v1299_v11 }
 0x29e   :  { %v740_v15 = vpop.xlane.xlu0 %739 }
 0x29f   :  { %v745_v16 = vrot.slane %v740_v15, %v2391_v38  ;;  %v749_v17 = vrot.slane %v740_v15, %v2397_v40  ;;  %v753_v18 = vrot.slane %v740_v15, %v2533_v13  ;;  %v757_v24 = vrot.slane %v740_v15, %v2536_v14 }
 0x2a0   :  { %v761_v37 = vrot.slane %v740_v15, %v2544_v21  ;;  %v765_v46 = vrot.slane %v740_v15, %v2549_v32  ;;  %v769_v56 = vrot.slane %v740_v15, %v2560_v42  ;;  %v773_v35 = vrot.slane %v740_v15, %v2568_v54 }
 0x2a1   :  { %v782_v19 = vsub.f32 %v2457_v22, %v745_v16  ;;  %v783_v20 = vsub.f32 %v2466_v52, %v749_v17  ;;  %v784_v27 = vsub.f32 %v2459_v23, %v753_v18  ;;  %v785_v22 = vsub.f32 %v2480_v31, %v757_v24 }
 0x2a2   :  { %v786_v47 = vsub.f32 %v2475_v29, %v761_v37  ;;  %v787_v57 = vsub.f32 %v2486_v36, %v765_v46  ;;  %v788_v36 = vsub.f32 %v2494_v43, %v769_v56  ;;  %v406_v46 = vld [vmem:[#allocation11 + $0x28] sm:$0xff] }
 0x2a3   :  { %v790_v30 = vmul.f32 1.442695, %v782_v19  ;;  %v792_v34 = vmul.f32 1.442695, %v783_v20  ;;  %v794_v52 = vmul.f32 1.442695, %v784_v27 }
 0x2a4   :  { %v796_v48 = vmul.f32 1.442695, %v785_v22  ;;  %v800_v61 = vmul.f32 1.442695, %v787_v57  ;;  %v802_v4 = vmul.f32 1.442695, %v788_v36 }
 0x2a5   :  { %1932 = vpow2.f32 %v790_v30  ;;  %v2551_v33 = vpop.xlane.xlu1 %1300  ;;  %v402_v22 = vld [vmem:[#allocation11 + $0x8] sm:$0xff]  ;;  %v141_v57 = vld [vmem:[#allocation7] sm:$0xff]  ;;  %v147_v36 = vld [vmem:[#allocation7 + $0x30] sm:$0xff] }
 0x2a6   :  { %1934 = vpow2.f32 %v792_v34  ;;  %v1318_v39 = vrot.slane %v2551_v33, %v2536_v14  ;;  %v1322_v23 = vrot.slane %v2551_v33, %v2544_v21  ;;  %v1326_v31 = vrot.slane %v2551_v33, %v2549_v32 }
 0x2a7   :  { %1936 = vpow2.f32 %v794_v52  ;;  %v1334_v29 = vrot.slane %v2551_v33, %v2568_v54  ;;  %v1306_v5 = vrot.slane %v2551_v33, %v2391_v38  ;;  %v1310_v8 = vrot.slane %v2551_v33, %v2397_v40  ;;  %v404_v52 = vld [vmem:[#allocation11 + $0x18] sm:$0xff] }
 0x2a8   :  { %v1346_v45 = vsub.f32 %v2490_v41, %v1318_v39  ;;  %v1347_v49 = vsub.f32 %v1244_v50, %v1322_v23  ;;  %1938 = vpow2.f32 %v796_v48  ;;  %v798_v41 = vmul.f32 1.442695, %v786_v47  ;;  %v401_v39 = vld [vmem:[#allocation11] sm:$0xff]  ;;  %v408_v47 = vld [vmem:[#allocation11 + $0x38] sm:$0xff] }
 0x2a9   :  { %v1348_v60 = vsub.f32 %v1246_v62, %v1326_v31  ;;  %v1350_v1 = vsub.f32 %v1250_v7, %v1334_v29  ;;  %v789_v62 = vsub.f32 %v2509_v55, %v773_v35  ;;  %v1343_v55 = vsub.f32 %v2461_v51, %v1306_v5  ;;  %v143_v29 = vld [vmem:[#allocation7 + $0x10] sm:$0xff]  ;;  %v146_v35 = vld [vmem:[#allocation7 + $0x28] sm:$0xff] }
 0x2aa   :  { %v1357_v53 = vmul.f32 1.442695, %v1346_v45  ;;  %v1359_v50 = vmul.f32 1.442695, %v1347_v49  ;;  %v1314_v11 = vrot.slane %v2551_v33, %v2533_v13  ;;  %v1344_v12 = vsub.f32 %v2464_v25, %v1310_v8  ;;  %v403_v45 = vld [vmem:[#allocation11 + $0x10] sm:$0xff]  ;;  %v405_v49 = vld [vmem:[#allocation11 + $0x20] sm:$0xff] }
 0x2ab   :  { %v1361_v2 = vmul.f32 1.442695, %v1348_v60  ;;  %v1365_v43 = vmul.f32 1.442695, %v1350_v1  ;;  %v804_v7 = vmul.f32 1.442695, %v789_v62  ;;  %v1330_v17 = vrot.slane %v2551_v33, %v2560_v42 }
 0x2ac   :  { %1940 = vpow2.f32 %v1357_v53  ;;  %v1351_v15 = vmul.f32 1.442695, %v1343_v55  ;;  %v1345_v18 = vsub.f32 %v2473_v28, %v1314_v11  ;;  %v1353_v19 = vmul.f32 1.442695, %v1344_v12  ;;  %v407_v53 = vld [vmem:[#allocation11 + $0x30] sm:$0xff]  ;;  %v144_v60 = vld [vmem:[#allocation7 + $0x18] sm:$0xff] }
 0x2ad   :  { %1942 = vpow2.f32 %v798_v41  ;;  %v1349_v24 = vsub.f32 %v2521_v3, %v1330_v17  ;;  %v1855_v23 = vpack.c.bf16 %v404_v52, %v402_v22  ;;  %v1857_v48 = vpack.c.bf16 %v403_v45, %v401_v39  ;;  %v142_v41 = vld [vmem:[#allocation7 + $0x8] sm:$0xff] }
 0x2ae   :  { %1944 = vpow2.f32 %v1359_v50  ;;  %v1355_v27 = vmul.f32 1.442695, %v1345_v18  ;;  %v1859_v31 = vpack.c.bf16 %v408_v47, %v406_v46  ;;  %v1861_v56 = vpack.c.bf16 %v407_v53, %v405_v49  ;;  %v145_v50 = vld [vmem:[#allocation7 + $0x20] sm:$0xff] }
 0x2af   :  { %v2572_v58 = vpop.eup %1932  ;;  %1946 = vpow2.f32 %v800_v61  ;;  %v1363_v28 = vmul.f32 1.442695, %v1349_v24  ;;  %1856 = vmatprep.subr.bf16.mxu0 %v1855_v23  ;;  %v148_v61 = vld [vmem:[#allocation7 + $0x38] sm:$0xff] }
 0x2b0   :  { %v2574_v59 = vpop.eup %1934  ;;  %815 = vperm.xlu0 %1930, %v2572_v58   ;;  %1948 = vpow2.f32 %v1361_v2  ;;  %1858 = vmatpush1.bf16.msra.mxu0 %v1857_v48 }
 0x2b1   :  { %818 = vperm.xlu1 %1931, %v2574_v59   ;;  %v2582_v63 = vpop.eup %1936  ;;  %1950 = vpow2.f32 %v802_v4  ;;  %1860 = vmatprep.subr.bf16.mxu0 %v1859_v31 }
 0x2b2   :  { %v2588_v44 = vpop.eup %1938  ;;  %1952 = vpow2.f32 %v1365_v43 }
 0x2b3   :  { %1954 = vpow2.f32 %v804_v7 }
 0x2b4   :  { %1956 = vpow2.f32 %v1351_v15  ;;  %1862 = vmatpush1.bf16.msra.mxu0 %v1861_v56 }
 0x2b5   :  { %821 = vperm.xlu1 %1931, %v2582_v63   ;;  %1958 = vpow2.f32 %v1353_v19 }
 0x2b6   :  { %v2591_v6 = vpop.eup %1940  ;;  %1960 = vpow2.f32 %v1355_v27 }
 0x2b7   :  { %1385 = vperm.xlu0 %1930, %v2591_v6   ;;  %v2597_v9 = vpop.eup %1942  ;;  %1962 = vpow2.f32 %v1363_v28  ;;  %1726 = vmatmul.mubr.msk.f32.vlgmr.msra.gmra.mrb[2].mxu0 %vm169_vm0, %v141_v57 }
 0x2b8   :  { %v2600_v10 = vpop.eup %1944  ;;  %515 = vmatprep.mubr.f32.mxu0 %v2193_v0 }
 0x2b9   :  { %824 = vperm.xlu1 %1931, %v2588_v44   ;;  %v2606_v16 = vpop.eup %1946 }
 0x2ba   :  { %v2609_v51 = vpop.eup %1948 }
 0x2bb   :  { %1388 = vperm.xlu0 %1930, %v2600_v10   ;;  %v2615_v20 = vpop.eup %1950  ;;  %1727 = vmatmul.mubr.msk.f32.gmra.mrb[4].mxu0 %vm169_vm0, %v142_v41 }
 0x2bc   :  { %v2618_v25 = vpop.eup %1952  ;;  %521 = vmatprep.mubr.f32.mxu0 %v2193_v0 }
 0x2bd   :  { %827 = vperm.xlu1 %1931, %v2597_v9   ;;  %v2622_v30 = vpop.eup %1954 }
 0x2be   :  { %v2625_v34 = vpop.eup %1956 }
 0x2bf   :  { %1391 = vperm.xlu0 %1930, %v2609_v51   ;;  %v2628_v33 = vpop.eup %1958  ;;  %1728 = vmatmul.mubr.msk.f32.gmra.mrb[6].mxu0 %vm169_vm0, %v143_v29 }
 0x2c0   :  { %v2631_v3 = vpop.eup %1960  ;;  %527 = vmatprep.mubr.f32.mxu0 %v2193_v0 }
 0x2c1   :  { %830 = vperm.xlu1 %1931, %v2606_v16   ;;  %v2634_v37 = vpop.eup %1962 }
 0x2c3   :  { %1397 = vperm.xlu0 %1930, %v2618_v25   ;;  %1729 = vmatmul.mubr.msk.f32.gmra.mrb[8].mxu0 %vm169_vm0, %v144_v60 }
 0x2c4   :  { %533 = vmatprep.mubr.f32.mxu0 %v2193_v0 }
 0x2c5   :  { %833 = vperm.xlu1 %1931, %v2615_v20  }
 0x2c7   :  { %1730 = vmatmul.mubr.msk.f32.gmra.mrb[10].mxu0 %vm169_vm0, %v145_v50 }
 0x2c8   :  { %539 = vmatprep.mubr.f32.mxu0 %v2193_v0 }
 0x2c9   :  { %836 = vperm.xlu1 %1931, %v2622_v30  }
 0x2cb   :  { %1731 = vmatmul.mubr.msk.f32.gmra.mrb[12].mxu0 %vm169_vm0, %v146_v35 }
 0x2cc   :  { %545 = vmatprep.mubr.f32.mxu0 %v2193_v0 }
 0x2cd   :  { %1376 = vperm.xlu1 %1931, %v2625_v34  }
 0x2cf   :  { %1732 = vmatmul.mubr.msk.f32.gmra.mrb[14].mxu0 %vm169_vm0, %v147_v36 }
 0x2d0   :  { %551 = vmatprep.mubr.f32.mxu0 %v2193_v0 }
 0x2d1   :  { %1379 = vperm.xlu1 %1931, %v2628_v33  }
 0x2d3   :  { %1733 = vmatmul.mubr.msk.f32.gmra.mrb[16].mxu0 %vm169_vm0, %v148_v61 }
 0x2d4   :  { %1801 = vmatprep.mubr.msk.f32.mxu0 %vm2197_vm9, %v2193_v0 }
 0x2d5   :  { %1382 = vperm.xlu1 %1931, %v2631_v3  }
 0x2d9   :  { %1394 = vperm.xlu1 %1931, %v2634_v37  }
 0x32f   :  { %v816_v5 = vpop.permute.xlu0 %815 }
 0x330   :  { %v819_v1 = vpop.permute.xlu1 %818  ;;  %v841_v8 = vrot.slane %v816_v5, %v2469_v26 }
 0x331   :  { %v845_v7 = vrot.slane %v819_v1, %v2469_v26 }
 0x333   :  { %v870_v17 = vsel %vm722_vm1, %v845_v7, %v841_v8 }
 0x334   :  { %v822_v2 = vpop.permute.xlu1 %821 }
 0x335   :  { %v849_v55 = vrot.slane %v822_v2, %v2469_v26 }
 0x336   :  { %v1386_v18 = vpop.permute.xlu0 %1385 }
 0x337   :  { %v871_v24 = vsel %vm724_vm2, %v849_v55, %v870_v17  ;;  %v1414_v60 = vrot.slane %v1386_v18, %v2469_v26 }
 0x338   :  { %v825_v62 = vpop.permute.xlu1 %824 }
 0x339   :  { %v853_v11 = vrot.slane %v825_v62, %v2469_v26 }
 0x33a   :  { %v1389_v46 = vpop.permute.xlu0 %1388 }
 0x33b   :  { %v872_v28 = vsel %vm726_vm3, %v853_v11, %v871_v24  ;;  %v1418_v35 = vrot.slane %v1389_v46, %v2469_v26 }
 0x33c   :  { %v828_v4 = vpop.permute.xlu1 %827 }
 0x33d   :  { %v857_v12 = vrot.slane %v828_v4, %v2469_v26 }
 0x33e   :  { %v1392_v53 = vpop.permute.xlu0 %1391 }
 0x33f   :  { %v873_v22 = vsel %vm728_vm4, %v857_v12, %v872_v28  ;;  %v1422_v1 = vrot.slane %v1392_v53, %v2469_v26 }
 0x340   :  { %v831_v43 = vpop.permute.xlu1 %830 }
 0x341   :  { %v861_v19 = vrot.slane %v831_v43, %v2469_v26 }
 0x342   :  { %v1398_v36 = vpop.permute.xlu0 %1397 }
 0x343   :  { %v874_v39 = vsel %vm730_vm5, %v861_v19, %v873_v22  ;;  %v1430_v43 = vrot.slane %v1398_v36, %v2469_v26 }
 0x344   :  { %v834_v15 = vpop.permute.xlu1 %833 }
 0x345   :  { %v865_v27 = vrot.slane %v834_v15, %v2469_v26 }
 0x347   :  { %v875_v45 = vsel %vm732_vm6, %v865_v27, %v874_v39 }
 0x348   :  { %v837_v52 = vpop.permute.xlu1 %836 }
 0x349   :  { %v869_v23 = vrot.slane %v837_v52, %v2469_v26 }
 0x34b   :  { %v876_v47 = vsel %vm734_vm7, %v869_v23, %v875_v45 }
 0x34c   :  { %v1377_v48 = vpop.permute.xlu1 %1376  ;;  %v878_v31 = vsel %vm737_vm8, %v876_v47, 0.0 }
 0x34d   :  { %879 = vadd.xlane.f32.xlu1 %v878_v31  ;;  %v1402_v57 = vrot.slane %v1377_v48, %v2469_v26 }
 0x350   :  { %v1380_v49 = vpop.permute.xlu1 %1379 }
 0x351   :  { %v1406_v56 = vrot.slane %v1380_v49, %v2469_v26 }
 0x353   :  { %v1431_v50 = vsel %vm722_vm1, %v1406_v56, %v1402_v57 }
 0x354   :  { %v1383_v41 = vpop.permute.xlu1 %1382 }
 0x355   :  { %v1410_v29 = vrot.slane %v1383_v41, %v2469_v26 }
 0x357   :  { %v1432_v61 = vsel %vm724_vm2, %v1410_v29, %v1431_v50 }
 0x358   :  { %v1433_v2 = vsel %vm726_vm3, %v1414_v60, %v1432_v61  ;;  %v1395_v62 = vpop.permute.xlu1 %1394 }
 0x359   :  { %v1426_v4 = vrot.slane %v1395_v62, %v2469_v26  ;;  %v1434_v5 = vsel %vm728_vm4, %v1418_v35, %v1433_v2 }
 0x35a   :  { %v1435_v7 = vsel %vm730_vm5, %v1422_v1, %v1434_v5  ;;  %v1035_v5 = vld [vmem:[#allocation13 + $0x8] sm:$0xff] }
 0x35b   :  { %v1436_v8 = vsel %vm732_vm6, %v1426_v4, %v1435_v7  ;;  %v1034_v4 = vld [vmem:[#allocation13] sm:$0xff] }
 0x35c   :  { %v1437_v55 = vsel %vm734_vm7, %v1430_v43, %v1436_v8 }
 0x35d   :  { %v1439_v11 = vsel %vm737_vm8, %v1437_v55, 0.0 }
 0x35e   :  { %1440 = vadd.xlane.f32.xlu0 %v1439_v11 }
 0x38a   :  { %v2684_v12 = vpop.f32.mrb[2].mxu0 }
 0x38b   :  { %v2686_v15 = vpop.f32.mrb[3].mxu0 }
 0x38e   :  { %v2688_v17 = vpop.f32.mrb[4].mxu0 }
 0x38f   :  { %v2690_v18 = vpop.f32.mrb[5].mxu0 }
 0x392   :  { %v2692_v19 = vpop.f32.mrb[6].mxu0 }
 0x393   :  { %v2717_v36 = vpop.f32.mrb[7].mxu0 }
 0x3da   :  { %v880_v26 = vpop.xlane.xlu1 %879 }
 0x3db   :  { %v889_v24 = vrot.slane %v880_v26, %v2397_v40  ;;  %v885_v27 = vrot.slane %v880_v26, %v2391_v38  ;;  %v893_v28 = vrot.slane %v880_v26, %v2533_v13  ;;  %v897_v22 = vrot.slane %v880_v26, %v2536_v14 }
 0x3dc   :  { %v901_v52 = vrot.slane %v880_v26, %v2544_v21  ;;  %v905_v39 = vrot.slane %v880_v26, %v2549_v32  ;;  %v909_v23 = vrot.slane %v880_v26, %v2560_v42  ;;  %v913_v60 = vrot.slane %v880_v26, %v2568_v54  ;;  %v1037_v26 = vld [vmem:[#allocation13 + $0x18] sm:$0xff] }
 0x3dd   :  { %1964 = vrcp.f32 %v889_v24 }
 0x3de   :  { %1966 = vrcp.f32 %v885_v27 }
 0x3df   :  { %1968 = vrcp.f32 %v893_v28 }
 0x3e0   :  { %1970 = vrcp.f32 %v897_v22 }
 0x3e1   :  { %1972 = vrcp.f32 %v901_v52 }
 0x3e2   :  { %1974 = vrcp.f32 %v905_v39 }
 0x3e3   :  { %1976 = vrcp.f32 %v909_v23 }
 0x3e7   :  { %v1965_v45 = vpop.eup %1964 }
 0x3e8   :  { %v1967_v46 = vpop.eup %1966  ;;  %v925_v47 = vmul.f32 %v1965_v45, %v2574_v59  ;;  %v1038_v45 = vld [vmem:[#allocation13 + $0x20] sm:$0xff] }
 0x3e9   :  { %v1969_v48 = vpop.eup %1968  ;;  %v923_v31 = vmul.f32 %v1967_v46, %v2572_v58 }
 0x3ea   :  { %v1971_v49 = vpop.eup %1970  ;;  %945 = vperm.xlu1 %1931, %v925_v47   ;;  %v927_v56 = vmul.f32 %v1969_v48, %v2582_v63 }
 0x3eb   :  { %940 = vperm.xlu0 %1930, %v923_v31   ;;  %v2703_v53 = vpop.xlane.xlu0 %1440  ;;  %v1973_v29 = vpop.eup %1972  ;;  %v929_v58 = vmul.f32 %v1971_v49, %v2588_v44  ;;  %v1040_v31 = vld [vmem:[#allocation13 + $0x30] sm:$0xff]  ;;  %v1041_v49 = vld [vmem:[#allocation13 + $0x38] sm:$0xff] }
 0x3ec   :  { %v1450_v57 = vrot.slane %v2703_v53, %v2397_v40  ;;  %v1446_v41 = vrot.slane %v2703_v53, %v2391_v38  ;;  %v1454_v59 = vrot.slane %v2703_v53, %v2533_v13  ;;  %v931_v63 = vmul.f32 %v1973_v29, %v2597_v9  ;;  %v1975_v35 = vpop.eup %1974  ;;  %v2721_v44 = vpop.f32.mrb[8].mxu0 }
 0x3ed   :  { %v1458_v50 = vrot.slane %v2703_v53, %v2536_v14  ;;  %v1470_v13 = vrot.slane %v2703_v53, %v2560_v42  ;;  %v1977_v61 = vpop.eup %1976  ;;  %v933_v1 = vmul.f32 %v1975_v35, %v2606_v16  ;;  %v1462_v9 = vrot.slane %v2703_v53, %v2544_v21  ;;  %v2726_v2 = vpop.f32.mrb[9].mxu0  ;;  %v1598_v35 = vld [vmem:[#allocation13 + $0x98] sm:$0xff] }
 0x3ee   :  { %950 = vperm.xlu1 %1931, %v927_v56   ;;  %1978 = vrcp.f32 %v1450_v57  ;;  %v935_v14 = vmul.f32 %v1977_v61, %v2615_v20  ;;  %v2729_v62 = vpop.f32.mrb[10].mxu0  ;;  %v1466_v43 = vrot.slane %v2703_v53, %v2549_v32  ;;  %v1864_v16 = vpack.c.bf16 %v1035_v5, %v1034_v4  ;;  %v1036_v32 = vld [vmem:[#allocation13 + $0x10] sm:$0xff]  ;;  %v1595_v57 = vld [vmem:[#allocation13 + $0x80] sm:$0xff]  ;;  %v1600_v5 = vld [vmem:[#allocation13 + $0xa8] sm:$0xff] }
 0x3ef   :  { %955 = vperm.xlu0 %1930, %v929_v58   ;;  %1980 = vrcp.f32 %v1446_v41  ;;  %v2196_v21 = vmov 0.0|0.0   ;;  %v2736_v55 = vpop.f32.mrb[11].mxu0  ;;  %v1867_v27 = vpack.c.bf16 %v1037_v26, %v1036_v32  ;;  %v1873_v56 = vpack.c.bf16 %v1041_v49, %v1040_v31  ;;  %v1596_v41 = vld [vmem:[#allocation13 + $0x88] sm:$0xff]  ;;  %v1599_v4 = vld [vmem:[#allocation13 + $0xa0] sm:$0xff]  ;;  %v409_v49 = vld [vmem:[%s2854_s8] sm:$0x3] }
 0x3f0   :  { %1982 = vrcp.f32 %v1454_v59  ;;  %1863 = vmatprep.subr.bf16.mxu0 %v2196_v21  ;;  %1887 = vmatprep.subr.bf16.mxu1 %v2196_v21  ;;  %v2738_v11 = vpop.f32.mrb[12].mxu0  ;;  %v1888_v59 = vpack.c.bf16 %v1596_v41, %v1595_v57 }
 0x3f1   :  { %1984 = vrcp.f32 %v913_v60  ;;  %1865 = vmatpush3.bf16.msra.mxu0 %v1864_v16  ;;  %v2745_v39 = vpop.f32.mrb[13].mxu0  ;;  %v1042_v60 = vld [vmem:[#allocation13 + $0x40] sm:$0xff]  ;;  %v1047_v16 = vld [vmem:[#allocation13 + $0x68] sm:$0xff] }
 0x3f2   :  { %960 = vperm.xlu1 %1931, %v931_v63   ;;  %1986 = vrcp.f32 %v1458_v50  ;;  %1866 = vmatprep.subr.bf16.mxu0 %v2196_v21  ;;  %v2747_v23 = vpop.f32.mrb[14].mxu0  ;;  %v1043_v63 = vld [vmem:[#allocation13 + $0x48] sm:$0xff]  ;;  %v1597_v50 = vld [vmem:[#allocation13 + $0x90] sm:$0xff] }
 0x3f3   :  { %1988 = vrcp.f32 %v1470_v13  ;;  %v2755_v58 = vpop.f32.mrb[15].mxu0  ;;  %1889 = vmatpush3.bf16.msra.mxu1 %v1888_v59  ;;  %v1891_v13 = vpack.c.bf16 %v1598_v35, %v1597_v50 }
 0x3f4   :  { %1990 = vrcp.f32 %v1462_v9  ;;  %1890 = vmatprep.subr.bf16.mxu1 %v2196_v21  ;;  %v1045_v9 = vld [vmem:[#allocation13 + $0x58] sm:$0xff] }
 0x3f5   :  { %1992 = vrcp.f32 %v1466_v43  ;;  %1868 = vmatpush3.bf16.msra.mxu0 %v1867_v27  ;;  %v1894_v43 = vpack.c.bf16 %v1600_v5, %v1599_v4  ;;  %v1603_v27 = vld [vmem:[#allocation13 + $0xc0] sm:$0xff] }
 0x3f6   :  { %965 = vperm.xlu1 %1931, %v933_v1   ;;  %1869 = vmatprep.subr.bf16.mxu0 %v2196_v21  ;;  %v1044_v1 = vld [vmem:[#allocation13 + $0x50] sm:$0xff] }
 0x3f7   :  { %1892 = vmatpush3.bf16.msra.mxu1 %v1891_v13 }
 0x3f8   :  { %v1979_v42 = vpop.eup %1978  ;;  %1893 = vmatprep.subr.bf16.mxu1 %v2196_v21 }
 0x3f9   :  { %v1981_v7 = vpop.eup %1980  ;;  %v1486_v8 = vmul.f32 %v1979_v42, %v2628_v33  ;;  %v1474_v33 = vrot.slane %v2703_v53, %v2568_v54 }
 0x3fa   :  { %v1983_v20 = vpop.eup %1982  ;;  %970 = vperm.xlu1 %1931, %v935_v14   ;;  %v1484_v24 = vmul.f32 %v1981_v7, %v2625_v34  ;;  %v1039_v34 = vld [vmem:[#allocation13 + $0x28] sm:$0xff]  ;;  %v1879_v14 = vpack.c.bf16 %v1045_v9, %v1044_v1 }
 0x3fb   :  { %1506 = vperm.xlu0 %1930, %v1486_v8   ;;  %v1985_v28 = vpop.eup %1984  ;;  %v1488_v22 = vmul.f32 %v1983_v20, %v2631_v3  ;;  %1994 = vrcp.f32 %v1474_v33  ;;  %v1870_v54 = vpack.c.bf16 %v1039_v34, %v1038_v45  ;;  %1895 = vmatpush3.bf16.msra.mxu1 %v1894_v43  ;;  %v1601_v8 = vld [vmem:[#allocation13 + $0xb0] sm:$0xff]  ;;  %v1602_v20 = vld [vmem:[#allocation13 + $0xb8] sm:$0xff] }
 0x3fc   :  { %v1987_v52 = vpop.eup %1986  ;;  %v937_v46 = vmul.f32 %v1985_v28, %v2622_v30  ;;  %1896 = vmatprep.subr.bf16.mxu1 %v2196_v21  ;;  %v1897_v32 = vpack.c.bf16 %v1602_v20, %v1601_v8  ;;  %v1604_v28 = vld [vmem:[#allocation13 + $0xc8] sm:$0xff]  ;;  %v1606_v45 = vld [vmem:[#allocation13 + $0xd8] sm:$0xff] }
 0x3fd   :  { %v1989_v47 = vpop.eup %1988  ;;  %v1490_v48 = vmul.f32 %v1987_v52, %v2591_v6  ;;  %1871 = vmatpush3.bf16.msra.mxu0 %v1870_v54  ;;  %v2757_v6 = vpop.f32.mrb[16].mxu0  ;;  %v1605_v52 = vld [vmem:[#allocation13 + $0xd0] sm:$0xff]  ;;  %v1608_v54 = vld [vmem:[#allocation13 + $0xe8] sm:$0xff] }
 0x3fe   :  { %1501 = vperm.xlu1 %1931, %v1484_v24   ;;  %v1991_v3 = vpop.eup %1990  ;;  %1872 = vmatprep.subr.bf16.mxu0 %v2196_v21  ;;  %v1496_v53 = vmul.f32 %v1989_v47, %v2634_v37  ;;  %v1876_v37 = vpack.c.bf16 %v1043_v63, %v1042_v60  ;;  %v2767_v26 = vpop.f32.mrb[17].mxu0  ;;  %v1049_v24 = vld [vmem:[#allocation13 + $0x78] sm:$0xff]  ;;  %v1903_v34 = vpack.c.bf16 %v1606_v45, %v1605_v52 }
 0x3ff   :  { %1511 = vperm.xlu0 %1930, %v1488_v22   ;;  %v1492_v30 = vmul.f32 %v1991_v3, %v2600_v10  ;;  %v1993_v29 = vpop.eup %1992  ;;  %1898 = vmatpush3.bf16.msra.mxu1 %v1897_v32  ;;  %v1900_v22 = vpack.c.bf16 %v1604_v28, %v1603_v27  ;;  %v1610_v3 = vld [vmem:[#allocation13 + $0xf8] sm:$0xff]  ;;  %v2797_v28 = vrot.slane %v409_v49, %v2397_v40 }
 0x400   :  { %v1494_v10 = vmul.f32 %v1993_v29, %v2609_v51  ;;  %v1046_v51 = vld [vmem:[#allocation13 + $0x60] sm:$0xff]  ;;  %1899 = vmatprep.subr.bf16.mxu1 %v2196_v21 }
 0x401   :  { %1874 = vmatpush3.bf16.msra.mxu0 %v1873_v56  ;;  %v1882_v7 = vpack.c.bf16 %v1047_v16, %v1046_v51  ;;  %v514_v40 = vadd.f32 %v2686_v15, %v2797_v28 }
 0x402   :  { %975 = vperm.xlu1 %1931, %v937_v46   ;;  %1875 = vmatprep.subr.bf16.mxu0 %v2196_v21  ;;  %v1607_v46 = vld [vmem:[#allocation13 + $0xe0] sm:$0xff] }
 0x403   :  { %1516 = vperm.xlu0 %1930, %v1490_v48   ;;  %1901 = vmatpush3.bf16.msra.mxu1 %v1900_v22  ;;  %v1906_v47 = vpack.c.bf16 %v1608_v54, %v1607_v46  ;;  %v1609_v48 = vld [vmem:[#allocation13 + $0xf0] sm:$0xff]  ;;  %v520_v46 = vadd.f32 %v2690_v18, %v2797_v28  ;;  %v526_v18 = vadd.f32 %v2717_v36, %v2797_v28 }
 0x404   :  { %1902 = vmatprep.subr.bf16.mxu1 %v2196_v21  ;;  %v1909_v31 = vpack.c.bf16 %v1610_v3, %v1609_v48  ;;  %v532_v36 = vadd.f32 %v2726_v2, %v2797_v28  ;;  %v538_v2 = vadd.f32 %v2736_v55, %v2797_v28  ;;  %v544_v55 = vadd.f32 %v2745_v39, %v2797_v28 }
 0x405   :  { %v1995_v61 = vpop.eup %1994  ;;  %1877 = vmatpush3.bf16.msra.mxu0 %v1876_v37 }
 0x406   :  { %1531 = vperm.xlu1 %1931, %v1496_v53   ;;  %1878 = vmatprep.subr.bf16.mxu0 %v2196_v21  ;;  %v1498_v42 = vmul.f32 %v1995_v61, %v2618_v25  ;;  %v1048_v25 = vld [vmem:[#allocation13 + $0x70] sm:$0xff]  ;;  %v2780_v53 = vrot.slane %v409_v49, %v2391_v38 }
 0x407   :  { %1521 = vperm.xlu0 %1930, %v1492_v30   ;;  %v1885_v33 = vpack.c.bf16 %v1049_v24, %v1048_v25  ;;  %1904 = vmatpush3.bf16.msra.mxu1 %v1903_v34 }
 0x408   :  { %1905 = vmatprep.subr.bf16.mxu1 %v2196_v21  ;;  %v518_v0 = vadd.f32 %v2688_v17, %v2780_v53  ;;  %v512_v56 = vadd.f32 %v2684_v12, %v2780_v53  ;;  %v524_v41 = vadd.f32 %v2692_v19, %v2780_v53  ;;  %v530_v29 = vadd.f32 %v2721_v44, %v2780_v53 }
 0x409   :  { %1880 = vmatpush3.bf16.msra.mxu0 %v1879_v14  ;;  %v536_v17 = vadd.f32 %v2729_v62, %v2780_v53  ;;  %v542_v44 = vadd.f32 %v2738_v11, %v2780_v53  ;;  %v548_v32 = vadd.f32 %v2747_v23, %v2780_v53 }
 0x40a   :  { %1881 = vmatprep.subr.bf16.mxu0 %v2196_v21 }
 0x40b   :  { %1526 = vperm.xlu0 %1930, %v1494_v10   ;;  %1907 = vmatpush3.bf16.msra.mxu1 %v1906_v47 }
 0x40c   :  { %1908 = vmatprep.subr.bf16.mxu1 %v2196_v21 }
 0x40d   :  { %1883 = vmatpush3.bf16.msra.mxu0 %v1882_v7 }
 0x40e   :  { %1884 = vmatprep.subr.bf16.mxu0 %v2196_v21 }
 0x40f   :  { %1536 = vperm.xlu0 %1930, %v1498_v42   ;;  %1910 = vmatpush3.bf16.msra.mxu1 %v1909_v31 }
 0x411   :  { %1886 = vmatpush3.bf16.msra.mxu0 %v1885_v33 }
 0x469   :  { %v946_v57 = vpop.permute.xlu1 %945 }
 0x46a   :  { %v979_v30 = vmul.f32 %v946_v57, %v518_v0  ;;  %v941_v21 = vpop.permute.xlu0 %940 }
 0x46b   :  { %v978_v59 = vmul.f32 %v941_v21, %v512_v56 }
 0x46c   :  { %v992_v60 = vrot.slane %v979_v30, 4 }
 0x46d   :  { %v986_v63 = vrot.slane %v978_v59, 4  ;;  %v951_v38 = vpop.permute.xlu1 %950 }
 0x46e   :  { %v993_v37 = vadd.f32 %v992_v60, %v979_v30  ;;  %v980_v50 = vmul.f32 %v951_v38, %v524_v41  ;;  %v956_v35 = vpop.permute.xlu0 %955  ;;  %v554_v38 = vadd.f32 %v2757_v6, %v2780_v53 }
 0x46f   :  { %v987_v12 = vadd.f32 %v986_v63, %v978_v59  ;;  %v981_v10 = vmul.f32 %v956_v35, %v530_v29 }
 0x470   :  { %v994_v13 = vrot.slane %v993_v37, 2  ;;  %v998_v61 = vrot.slane %v980_v50, 4 }
 0x471   :  { %v988_v19 = vrot.slane %v987_v12, 2  ;;  %v1004_v1 = vrot.slane %v981_v10, 4  ;;  %v961_v9 = vpop.permute.xlu1 %960 }
 0x472   :  { %v995_v14 = vadd.f32 %v994_v13, %v993_v37  ;;  %v999_v4 = vadd.f32 %v998_v61, %v980_v50  ;;  %v982_v5 = vmul.f32 %v961_v9, %v536_v17 }
 0x473   :  { %v989_v42 = vadd.f32 %v988_v19, %v987_v12  ;;  %v1005_v43 = vadd.f32 %v1004_v1, %v981_v10 }
 0x474   :  { %v996_v51 = vrot.slane %v995_v14, 1  ;;  %v1000_v16 = vrot.slane %v999_v4, 2  ;;  %v1010_v7 = vrot.slane %v982_v5, 4 }
 0x475   :  { %v990_v8 = vrot.slane %v989_v42, 1  ;;  %v1006_v62 = vrot.slane %v1005_v43, 2  ;;  %v966_v20 = vpop.permute.xlu1 %965 }
 0x476   :  { %v997_v25 = vadd.f32 %v996_v51, %v995_v14  ;;  %v1001_v24 = vadd.f32 %v1000_v16, %v999_v4  ;;  %v1011_v33 = vadd.f32 %v1010_v7, %v982_v5  ;;  %v983_v27 = vmul.f32 %v966_v20, %v542_v44 }
 0x477   :  { %v991_v22 = vadd.f32 %v990_v8, %v989_v42  ;;  %v1007_v11 = vadd.f32 %v1006_v62, %v1005_v43  ;;  %v550_v14 = vadd.f32 %v2755_v58, %v2797_v28 }
 0x478   :  { %v1002_v52 = vrot.slane %v1001_v24, 1  ;;  %v1012_v45 = vrot.slane %v1011_v33, 2  ;;  %v1016_v34 = vrot.slane %v983_v27, 4 }
 0x479   :  { %v1058_v54 = vsel %vm722_vm1, %v997_v25, %v991_v22  ;;  %v1008_v47 = vrot.slane %v1007_v11, 1  ;;  %v971_v48 = vpop.permute.xlu1 %970 }
 0x47a   :  { %v1003_v23 = vadd.f32 %v1002_v52, %v1001_v24  ;;  %v1013_v3 = vadd.f32 %v1012_v45, %v1011_v33  ;;  %v1017_v31 = vadd.f32 %v1016_v34, %v983_v27  ;;  %v984_v0 = vmul.f32 %v971_v48, %v548_v32  ;;  %v1507_v56 = vpop.permute.xlu0 %1506 }
 0x47b   :  { %v1009_v49 = vadd.f32 %v1008_v47, %v1007_v11  ;;  %v1540_v57 = vmul.f32 %v1507_v56, %v520_v46 }
 0x47c   :  { %v1059_v41 = vsel %vm724_vm2, %v1003_v23, %v1058_v54  ;;  %v1014_v30 = vrot.slane %v1013_v3, 1  ;;  %v1018_v21 = vrot.slane %v1017_v31, 2  ;;  %v1022_v59 = vrot.slane %v984_v0, 4 }
 0x47d   :  { %v1060_v29 = vsel %vm726_vm3, %v1009_v49, %v1059_v41  ;;  %v1553_v60 = vrot.slane %v1540_v57, 4  ;;  %v1502_v63 = vpop.permute.xlu1 %1501 }
 0x47e   :  { %v1015_v37 = vadd.f32 %v1014_v30, %v1013_v3  ;;  %v1019_v50 = vadd.f32 %v1018_v21, %v1017_v31  ;;  %v1023_v15 = vadd.f32 %v1022_v59, %v984_v0  ;;  %v1539_v35 = vmul.f32 %v1502_v63, %v514_v40  ;;  %v1512_v17 = vpop.permute.xlu0 %1511 }
 0x47f   :  { %v1554_v12 = vadd.f32 %v1553_v60, %v1540_v57  ;;  %v1541_v10 = vmul.f32 %v1512_v17, %v526_v18 }
 0x480   :  { %v1061_v13 = vsel %vm728_vm4, %v1015_v37, %v1060_v29  ;;  %v1020_v61 = vrot.slane %v1019_v50, 1  ;;  %v1024_v19 = vrot.slane %v1023_v15, 2  ;;  %v1547_v1 = vrot.slane %v1539_v35, 4 }
 0x481   :  { %v1555_v9 = vrot.slane %v1554_v12, 2  ;;  %v1559_v6 = vrot.slane %v1541_v10, 4  ;;  %v976_v53 = vpop.permute.xlu1 %975  ;;  %v556_v37 = vadd.f32 %v2767_v26, %v2797_v28 }
 0x482   :  { %v1021_v4 = vadd.f32 %v1020_v61, %v1019_v50  ;;  %v1025_v5 = vadd.f32 %v1024_v19, %v1023_v15  ;;  %v1548_v44 = vadd.f32 %v1547_v1, %v1539_v35  ;;  %v985_v42 = vmul.f32 %v976_v53, %v554_v38  ;;  %v1517_v43 = vpop.permute.xlu0 %1516 }
 0x483   :  { %v1556_v51 = vadd.f32 %v1555_v9, %v1554_v12  ;;  %v1560_v16 = vadd.f32 %v1559_v6, %v1541_v10  ;;  %v1542_v7 = vmul.f32 %v1517_v43, %v532_v36 }
 0x484   :  { %v1026_v8 = vrot.slane %v1025_v5, 1  ;;  %v1549_v62 = vrot.slane %v1548_v44, 2  ;;  %v1028_v20 = vrot.slane %v985_v42, 4  ;;  %v1062_v32 = vsel %vm730_vm5, %v1021_v4, %v1061_v13 }
 0x485   :  { %v1557_v25 = vrot.slane %v1556_v51, 1  ;;  %v1561_v58 = vrot.slane %v1560_v16, 2  ;;  %v1565_v24 = vrot.slane %v1542_v7, 4  ;;  %v1532_v33 = vpop.permute.xlu1 %1531 }
 0x486   :  { %v1027_v27 = vadd.f32 %v1026_v8, %v1025_v5  ;;  %v1550_v22 = vadd.f32 %v1549_v62, %v1548_v44  ;;  %v1029_v11 = vadd.f32 %v1028_v20, %v985_v42  ;;  %v1545_v52 = vmul.f32 %v1532_v33, %v550_v14  ;;  %v1522_v45 = vpop.permute.xlu0 %1521 }
 0x487   :  { %v1562_v34 = vadd.f32 %v1561_v58, %v1560_v16  ;;  %v1566_v46 = vadd.f32 %v1565_v24, %v1542_v7  ;;  %v1543_v54 = vmul.f32 %v1522_v45, %v538_v2  ;;  %v1558_v40 = vadd.f32 %v1557_v25, %v1556_v51  ;;  %v1734_v24 = vld [vmem:[%s2856_s10] ss:$0 sm:$0xff] }
 0x488   :  { %v1551_v47 = vrot.slane %v1550_v22, 1  ;;  %v1030_v48 = vrot.slane %v1029_v11, 2  ;;  %v1583_v23 = vrot.slane %v1545_v52, 4  ;;  %v1063_v3 = vsel %vm732_vm6, %v1027_v27, %v1062_v32 }
 0x489   :  { %v1563_v31 = vrot.slane %v1562_v34, 1  ;;  %v1567_v0 = vrot.slane %v1566_v46, 2  ;;  %v1571_v56 = vrot.slane %v1543_v54, 4 }
 0x48a   :  { %v1552_v49 = vadd.f32 %v1551_v47, %v1550_v22  ;;  %v1031_v57 = vadd.f32 %v1030_v48, %v1029_v11  ;;  %v1584_v41 = vadd.f32 %v1583_v23, %v1545_v52  ;;  %v1527_v30 = vpop.permute.xlu0 %1526 }
 0x48b   :  { %v1564_v21 = vadd.f32 %v1563_v31, %v1562_v34  ;;  %v1568_v59 = vadd.f32 %v1567_v0, %v1566_v46  ;;  %v1572_v18 = vadd.f32 %v1571_v56, %v1543_v54  ;;  %v1544_v29 = vmul.f32 %v1527_v30, %v544_v55 }
 0x48c   :  { %v1619_v60 = vsel %vm722_vm1, %v1558_v40, %v1552_v49  ;;  %v1032_v63 = vrot.slane %v1031_v57, 1  ;;  %v1585_v38 = vrot.slane %v1584_v41, 2 }
 0x48d   :  { %v1620_v39 = vsel %vm724_vm2, %v1564_v21, %v1619_v60  ;;  %v1569_v50 = vrot.slane %v1568_v59, 1  ;;  %v1573_v15 = vrot.slane %v1572_v18, 2  ;;  %v1577_v35 = vrot.slane %v1544_v29, 4 }
 0x48e   :  { %v1033_v17 = vadd.f32 %v1032_v63, %v1031_v57  ;;  %v1537_v12 = vpop.permute.xlu0 %1536  ;;  %v1586_v1 = vadd.f32 %v1585_v38, %v1584_v41 }
 0x48f   :  { %v1570_v10 = vadd.f32 %v1569_v50, %v1568_v59  ;;  %v1574_v13 = vadd.f32 %v1573_v15, %v1572_v18  ;;  %v1578_v61 = vadd.f32 %v1577_v35, %v1544_v29  ;;  %v1546_v19 = vmul.f32 %v1537_v12, %v556_v37 }
 0x490   :  { %v1064_v36 = vsel %vm734_vm7, %v1033_v17, %v1063_v3  ;;  %v1587_v5 = vrot.slane %v1586_v1, 1 }
 0x491   :  { %v1621_v9 = vsel %vm726_vm3, %v1570_v10, %v1620_v39  ;;  %v1575_v14 = vrot.slane %v1574_v13, 1  ;;  %v1579_v6 = vrot.slane %v1578_v61, 2  ;;  %v1589_v53 = vrot.slane %v1546_v19, 4  ;;  %1802 = vmatmul.mubr.f32.vlgmr.msra.gmra.mrb[18].mxu0 %v1064_v36 }
 0x492   :  { %v1588_v7 = vadd.f32 %v1587_v5, %v1586_v1 }
 0x493   :  { %v1576_v26 = vadd.f32 %v1575_v14, %v1574_v13  ;;  %v1580_v28 = vadd.f32 %v1579_v6, %v1578_v61  ;;  %v1590_v4 = vadd.f32 %v1589_v53, %v1546_v19 }
 0x495   :  { %v1622_v44 = vsel %vm728_vm4, %v1576_v26, %v1621_v9  ;;  %v1581_v42 = vrot.slane %v1580_v28, 1  ;;  %v1591_v43 = vrot.slane %v1590_v4, 2 }
 0x497   :  { %v1582_v51 = vadd.f32 %v1581_v42, %v1580_v28  ;;  %v1592_v16 = vadd.f32 %v1591_v43, %v1590_v4 }
 0x499   :  { %v1593_v8 = vrot.slane %v1592_v16, 1  ;;  %v1623_v62 = vsel %vm730_vm5, %v1582_v51, %v1622_v44 }
 0x49a   :  { %v1624_v20 = vsel %vm732_vm6, %v1588_v7, %v1623_v62 }
 0x49b   :  { %v1594_v32 = vadd.f32 %v1593_v8, %v1592_v16 }
 0x49d   :  { %v1625_v2 = vsel %vm734_vm7, %v1594_v32, %v1624_v20 }
 0x49e   :  { %1837 = vmatmul.mubr.f32.vlgmr.msra.gmra.mrb[16].mxu1 %v1625_v2 }
 0x564   :  { %v1132_v25 = vpop.f32.mrb[18].mxu0 }
 0x565   :  { %v1803_v58 = vpop.f32.mrb[19].mxu0  ;;  %v1136_v33 = vadd.f32 %v1734_v24, %v1132_v25 }
 0x571   :  { %v1693_v27 = vpop.f32.mrb[16].mxu1 }
 0x572   :  { %v1697_v22 = vadd.f32 %v1693_v27, %v1136_v33  ;;  %v1838_v11 = vpop.f32.mrb[17].mxu1 }
 0x574   :  { %1698 = vst [vmem:[#allocation14] sm:$0xff] %v1697_v22 }
 0x575   :  { %2161 = shalt.err (!%p2158_p4)
}
 0x576   :  { %s2162_s19 = scalar_lea.hbm %s2857_s11, 128 }
 0x577   :  { %p2163_p5 = scmp.ne.s32.totalorder %s2857_s11, %s2162_s19  ;;  %p2166_p6 = scmp.lt.u32.totalorder %s2162_s19, %s2857_s11 }
 0x579   :  { %p2168_p7 = pnand %p2166_p6, %p2163_p5 }
 0x57b   :  { %2171 = shalt.err (!%p2168_p7)
}
 0x57c   :  { %1708 = dma.vmem_to_hbm [thread:$0]  %s1706_s15, 128, %s2857_s11, [#allocation4]  }
 0x57d   :  { %2180 = dma.done.wait [#allocation4], 128  }
 0x57e   :  { %2181 = vsyncadd [#allocation4], 4294967168 }
 0x57f   :  { %1712 = vsyncpa [#allocation3], 1 }
 0x580   :  { %1713 = vsyncpa [#allocation6], 1 }
 0x581   :  { %1714 = vsyncpa [#allocation9], 1 }
 0x582   :  { %1715 = vsyncpa [#allocation12], 1 }
 0x583   :  { %1716 = vsyncpa [#allocation4], 1 }

</bundles_post_ra>
